<compile_context>
chip_gen: v5e
topology: v5e:2x2
jax: 0.10.0
libtpu: 0.0.40
codegen_flags: <defaults>
</compile_context>

<pallas_src>
import jax
import jax.numpy as jnp
from jax.experimental import pallas as pl
from jax.experimental.pallas import tpu as pltpu

NEG_SLOPE = 0.01  # PyTorch LeakyReLU default

# (output parity along an axis, tap offset) -> (source sub-image parity, clamp shift).
# Reflection padding of the interleaved 2x image == edge clamp of the parity sub-images.
_SRC = {
    (0, -1): (1, -1), (0, 0): (0, 0), (0, 1): (1, 0),
    (1, -1): (0, 0),  (1, 0): (1, 0), (1, 1): (0, 1),
}


def _leaky(x):
    return jnp.where(x >= 0.0, x, NEG_SLOPE * x)


def _make_up_kernel(R, W, Cout):
    """R = output rows per grid step (input slab has R+2 rows incl. halo)."""
    Rp = R + 2
    RW = R * W
    C2 = 2 * Cout

    def kernel(x_ref, wt_ref, bt_ref, wc_ref, bc_ref, o_ref):
        # ---- stage 1: ConvTranspose2d(2, stride=2) + bias + LeakyReLU -------
        # x: ((R+2)*W, Cin) bf16 = input rows [t*R-1, t*R+R] (edge-clamped halo).
        # wt: (Cin, 4*Cout) bf16, columns ordered ((2a+b), cout).
        y = jnp.dot(x_ref[0, 0], wt_ref[...], preferred_element_type=jnp.float32)
        # Cast to bf16 once, before any tap assembly (copy-traffic reduction).
        y = _leaky(y + bt_ref[...]).astype(jnp.bfloat16)       # ((R+2)*W, 4*Cout)

        # Column shift with edge clamp along W (the W axis is not tiled, so the
        # W-direction reflection stays an in-tile clamp).
        # TODO(synk): for W not a multiple of the sublane tile, replace the reshape
        # round trip with pltpu.roll along the flat sublane axis + an iota%W where-fix.
        def cshift(sub_flat, cs):
            if W == 1:
                return sub_flat
            s = sub_flat.reshape(Rp, W, Cout)
            if cs < 0:   # out[w] = s[max(w-1, 0)]
                s = jnp.concatenate([s[:, :1], s[:, :-1]], axis=1)
            else:        # out[w] = s[min(w+1, W-1)]
                s = jnp.concatenate([s[:, 1:], s[:, -1:]], axis=1)
            return s.reshape(Rp * W, Cout)

        # quad[a]: the four column-processed variants of row-parity-a sub-images,
        # lane-concatenated as [cshift(sub[a,1],-1) | sub[a,0] | sub[a,1] | cshift(sub[a,0],+1)].
        # Sliced at [0:3C] it is the dc=-1,0,+1 column taps for output col-parity b=0,
        # at [C:4C] the taps for b=1 — which is exactly what the banded weight expects.
        quads = []
        for a in range(2):
            mid = y[:, 2 * a * Cout:(2 * a + 2) * Cout]                    # sub[a,0] | sub[a,1]
            left = cshift(y[:, (2 * a + 1) * Cout:(2 * a + 2) * Cout], -1)  # sub[a,1] shifted -1
            right = cshift(y[:, 2 * a * Cout:(2 * a + 1) * Cout], +1)       # sub[a,0] shifted +1
            quads.append(jnp.concatenate([left, mid, right], axis=1))      # ((R+2)*W, 4*Cout)

        # ---- stage 2: ReflectionPad2d(1) + Conv2d(3x3) + bias + LeakyReLU ---
        # Per output row parity `a`: 3 accumulating dots (one per kernel row dr),
        # each against the block-banded weight wc_ref[dr+1] : (4*Cout, 2*Cout),
        # producing both output column parities (b=0 | b=1) at once.
        for a in range(2):
            acc = None
            for dr in (-1, 0, 1):
                pr, rs = _SRC[(a, dr)]                 # source row parity / row shift
                lhs = quads[pr][(1 + rs) * W:(1 + rs) * W + RW, :]   # (R*W, 4*Cout)
                part = jnp.dot(lhs, wc_ref[dr + 1],
                               preferred_element_type=jnp.float32)   # (R*W, 2*Cout)
                acc = part if acc is None else acc + part
            out_a = _leaky(acc + bc_ref[...]).astype(o_ref.dtype)
            # In-place, 128-lane-aligned slice write into the lane-dense output block.
            o_ref[0, :, 2 * a * Cout:2 * a * Cout + C2] = out_a

    return kernel


def up_forward(x_nchw, params, *, rows_per_tile=8):
    """Forward pass of the `up` block. Input/output are NCHW f32 like PyTorch."""
    wt, bt = params["wt"], params["bt"]   # ConvTranspose2d: (Cin, Cout, 2, 2), (Cout,)
    wc, bc = params["wc"], params["bc"]   # Conv2d:          (Cout, Cout, 3, 3), (Cout,)
    N, Cin, H, W = x_nchw.shape
    Cout = bt.shape[0]

    # Row tile: largest value <= rows_per_tile that divides H.
    R = max(1, min(rows_per_tile, H))
    while H % R:
        R -= 1
    T = H // R
    Rp = R + 2

    # NCHW -> NHWC bf16 with an edge-clamped +/-1-row halo per tile (one fused XLA
    # transpose+gather+cast; the halo makes all in-kernel row taps plain slices).
    # TODO(synk): when chaining `up` blocks, keep activations in the kernel's
    # (N, HW, 4*Cout) bf16 parity layout between blocks and skip these wrapper passes.
    x_nhwc = jnp.transpose(x_nchw, (0, 2, 3, 1)).astype(jnp.bfloat16)       # (N,H,W,Cin)
    rows = jnp.clip(jnp.arange(T)[:, None] * R + jnp.arange(-1, R + 1)[None, :], 0, H - 1)
    x_tiles = jnp.take(x_nhwc, rows, axis=1).reshape(N, T, Rp * W, Cin)     # (N,T,(R+2)*W,Cin)

    # ConvTranspose2d weight -> (Cin, 4*Cout), columns ordered ((2a+b), cout).
    wt4 = jnp.transpose(wt, (0, 2, 3, 1)).reshape(Cin, 4 * Cout).astype(jnp.bfloat16)
    bt4 = jnp.tile(bt, 4).reshape(1, 4 * Cout).astype(jnp.float32)

    # Conv2d 3x3 weight -> block-banded "polyphase" form: for each kernel row h,
    # a (4*Cout, 2*Cout) matrix acting on the quad layout and emitting (b=0 | b=1).
    wperm = jnp.transpose(wc, (2, 3, 1, 0))              # (kh, kw, cin, cout)
    zero = jnp.zeros((Cout, Cout), wperm.dtype)
    bands = []
    for h in range(3):
        w0, w1, w2 = wperm[h, 0], wperm[h, 1], wperm[h, 2]      # dc = -1, 0, +1
        left = jnp.concatenate([w0, w1, w2, zero], axis=0)      # output col parity b=0
        right = jnp.concatenate([zero, w0, w1, w2], axis=0)     # output col parity b=1
        bands.append(jnp.concatenate([left, right], axis=1))
    wc_band = jnp.stack(bands, axis=0).astype(jnp.bfloat16)     # (3, 4*Cout, 2*Cout)
    bc2 = jnp.tile(bc, 2).reshape(1, 2 * Cout).astype(jnp.float32)

    # TODO(synk): pin the four constant weight/bias specs to pl.Buffered(1) once the
    # target jax version is confirmed to accept buffer_count=1 (frees a little VMEM).
    out_flat = pl.pallas_call(
        _make_up_kernel(R, W, Cout),
        out_shape=jax.ShapeDtypeStruct((N, H * W, 4 * Cout), jnp.bfloat16),
        grid=(N, T),
        in_specs=[
            pl.BlockSpec((1, 1, Rp * W, Cin), lambda n, t: (n, t, 0, 0)),
            pl.BlockSpec((Cin, 4 * Cout), lambda n, t: (0, 0)),
            pl.BlockSpec((1, 4 * Cout), lambda n, t: (0, 0)),
            pl.BlockSpec((3, 4 * Cout, 2 * Cout), lambda n, t: (0, 0, 0)),
            pl.BlockSpec((1, 2 * Cout), lambda n, t: (0, 0)),
        ],
        out_specs=pl.BlockSpec((1, R * W, 4 * Cout), lambda n, t: (n, t, 0)),
        compiler_params=pltpu.CompilerParams(
            dimension_semantics=("parallel", "parallel"),   # batch and row tiles
            vmem_limit_bytes=40 * 1024 * 1024,              # headroom on v7x's 64 MiB
        ),
    )(x_tiles, wt4, bt4, wc_band, bc2)

    # (n, h*W+w, (2a+b)*Cout + c) -> NCHW (n, c, 2h+a, 2w+b); f32 at the module boundary.
    out = out_flat.reshape(N, H, W, 2, 2, Cout)
    out = jnp.transpose(out, (0, 5, 1, 3, 2, 4)).reshape(N, Cout, 2 * H, 2 * W)
    return out.astype(jnp.float32)


def up_reference(x_nchw, params):
    """Pure-JAX reference mirroring the kernel's bf16 quantization points."""
    wt, bt = params["wt"], params["bt"]
    wc, bc = params["wc"], params["bc"]
    N, Cin, H, W = x_nchw.shape
    Cout = bt.shape[0]
    bf = lambda v: v.astype(jnp.bfloat16).astype(jnp.float32)

    x = bf(jnp.transpose(x_nchw, (0, 2, 3, 1)))                          # (N,H,W,Cin)
    w4 = bf(jnp.transpose(wt, (0, 2, 3, 1)).reshape(Cin, 4 * Cout))
    y = x.reshape(N * H * W, Cin) @ w4 + jnp.tile(bt, 4)
    y = jnp.where(y >= 0.0, y, NEG_SLOPE * y)
    y = bf(y)                                                            # kernel casts y once
    y = y.reshape(N, H, W, 2, 2, Cout)
    y = jnp.transpose(y, (0, 1, 3, 2, 4, 5)).reshape(N, 2 * H, 2 * W, Cout)

    yp = jnp.pad(y, ((0, 0), (1, 1), (1, 1), (0, 0)), mode="reflect")
    H2, W2 = 2 * H, 2 * W
    patches = jnp.concatenate(
        [yp[:, dh:dh + H2, dw:dw + W2, :] for dh in range(3) for dw in range(3)],
        axis=-1)
    w9 = bf(jnp.transpose(wc, (2, 3, 1, 0)).reshape(9 * Cout, Cout))
    out = patches.reshape(N * H2 * W2, 9 * Cout) @ w9 + bc
    out = jnp.where(out >= 0.0, out, NEG_SLOPE * out)
    return jnp.transpose(out.reshape(N, H2, W2, Cout), (0, 3, 1, 2))


def init_params(key, in_ch, out_ch):
    k1, k2, k3, k4 = jax.random.split(key, 4)
    return dict(
        wt=0.1 * jax.random.normal(k1, (in_ch, out_ch, 2, 2), jnp.float32),
        bt=0.1 * jax.random.normal(k2, (out_ch,), jnp.float32),
        wc=0.1 * jax.random.normal(k3, (out_ch, out_ch, 3, 3), jnp.float32),
        bc=0.1 * jax.random.normal(k4, (out_ch,), jnp.float32),
    )


if __name__ == "__main__":
    key = jax.random.PRNGKey(0)
    kx, kp = jax.random.split(key)

    # Decoder stage `up(128, 64)` of PercepNet0 at a small spatial size.
    in_ch, out_ch = 128, 64
    N, H, W = 2, 16, 16
    x = jax.random.normal(kx, (N, in_ch, H, W), jnp.float32)   # NCHW, like PyTorch
    params = init_params(kp, in_ch, out_ch)

    fwd = jax.jit(lambda xx, pp: up_forward(xx, pp, rows_per_tile=4))
    out = jax.block_until_ready(fwd(x, params))
    assert out.shape == (N, out_ch, 2 * H, 2 * W), out.shape

    # Tightened check against a bf16-quantized reference (kernel stores bf16 output).
    ref = up_reference(x, params)
    max_err = float(jnp.max(jnp.abs(out - ref)))
    assert jnp.allclose(out, ref, atol=3e-2, rtol=3e-2), f"max_abs_err={max_err}"

    print("KERNEL_OK")
</pallas_src>

<mosaic_0001>
module attributes {stable_mosaic.version = 11 : i64} {
  func.func @kernel(%arg0: i32, %arg1: i32, %arg2: memref<1x1x96x128xbf16, #tpu.memory_space<vmem>>, %arg3: memref<128x256xbf16, #tpu.memory_space<vmem>>, %arg4: memref<1x256xf32, #tpu.memory_space<vmem>>, %arg5: memref<3x256x128xbf16, #tpu.memory_space<vmem>>, %arg6: memref<1x128xf32, #tpu.memory_space<vmem>>, %arg7: memref<1x64x256xbf16, #tpu.memory_space<vmem>>) attributes {dimension_semantics = [#tpu.dimension_semantics<parallel>, #tpu.dimension_semantics<parallel>], iteration_bounds = array<i64: 2, 4>, scalar_prefetch = 0 : i64, scratch_operands = 0 : i64, tpu.core_type = #tpu.core_type<tc>, window_params = [{transform_indices = @transform_0, window_bounds = array<i64: 1, 1, 96, 128>}, {pipeline_mode = #tpu.pipeline_mode<synchronous>, transform_indices = @transform_1, window_bounds = array<i64: 128, 256>}, {pipeline_mode = #tpu.pipeline_mode<synchronous>, transform_indices = @transform_2, window_bounds = array<i64: 1, 256>}, {pipeline_mode = #tpu.pipeline_mode<synchronous>, transform_indices = @transform_3, window_bounds = array<i64: 3, 256, 128>}, {pipeline_mode = #tpu.pipeline_mode<synchronous>, transform_indices = @transform_4, window_bounds = array<i64: 1, 128>}, {transform_indices = @transform_5, window_bounds = array<i64: 1, 64, 256>}]} {
    %c0 = arith.constant 0 : index
    %c0_0 = arith.constant 0 : index
    %c0_1 = arith.constant 0 : index
    %c0_2 = arith.constant 0 : index
    %0 = vector.load %arg2[%c0, %c0_0, %c0_1, %c0_2] : memref<1x1x96x128xbf16, #tpu.memory_space<vmem>>, vector<1x1x96x128xbf16>
    %1 = vector.shape_cast %0 : vector<1x1x96x128xbf16> to vector<96x128xbf16>
    %c0_3 = arith.constant 0 : index
    %c0_4 = arith.constant 0 : index
    %2 = vector.load %arg3[%c0_3, %c0_4] : memref<128x256xbf16, #tpu.memory_space<vmem>>, vector<128x256xbf16>
    %cst = arith.constant dense<0.000000e+00> : vector<96x256xf32>
    %3 = tpu.matmul %1, %2, %cst {dimension_numbers = #tpu.dot_dimension_numbers<[1], [0], [0], [1], [0, 0, 1, 1], [], []>} : vector<96x128xbf16>, vector<128x256xbf16>, vector<96x256xf32> -> vector<96x256xf32>
    %c0_5 = arith.constant 0 : index
    %c0_6 = arith.constant 0 : index
    %4 = vector.load %arg4[%c0_5, %c0_6] : memref<1x256xf32, #tpu.memory_space<vmem>>, vector<1x256xf32>
    %5 = vector.broadcast %4 : vector<1x256xf32> to vector<96x256xf32>
    %6 = arith.addf %3, %5 : vector<96x256xf32>
    %cst_7 = arith.constant 0.000000e+00 : f32
    %7 = vector.broadcast %cst_7 : f32 to vector<96x256xf32>
    %8 = arith.cmpf oge, %6, %7 : vector<96x256xf32>
    %cst_8 = arith.constant 0.00999999977 : f32
    %9 = vector.broadcast %cst_8 : f32 to vector<96x256xf32>
    %10 = arith.mulf %9, %6 : vector<96x256xf32>
    %11 = arith.select %8, %6, %10 : vector<96x256xi1>, vector<96x256xf32>
    %12 = arith.truncf %11 : vector<96x256xf32> to vector<96x256xbf16>
    %13 = vector.extract_strided_slice %12 {offsets = [0, 0], sizes = [96, 128], strides = [1, 1]} : vector<96x256xbf16> to vector<96x128xbf16>
    %14 = vector.extract_strided_slice %12 {offsets = [0, 64], sizes = [96, 64], strides = [1, 1]} : vector<96x256xbf16> to vector<96x64xbf16>
    %15 = vector.shape_cast %14 : vector<96x64xbf16> to vector<6x16x64xbf16>
    %16 = vector.extract_strided_slice %15 {offsets = [0, 0, 0], sizes = [6, 1, 64], strides = [1, 1, 1]} : vector<6x16x64xbf16> to vector<6x1x64xbf16>
    %17 = vector.extract_strided_slice %15 {offsets = [0, 0, 0], sizes = [6, 15, 64], strides = [1, 1, 1]} : vector<6x16x64xbf16> to vector<6x15x64xbf16>
    %18 = tpu.concatenate %16, %17 in 1 : vector<6x1x64xbf16>, vector<6x15x64xbf16> -> vector<6x16x64xbf16>
    %19 = vector.shape_cast %18 : vector<6x16x64xbf16> to vector<96x64xbf16>
    %20 = vector.extract_strided_slice %12 {offsets = [0, 0], sizes = [96, 64], strides = [1, 1]} : vector<96x256xbf16> to vector<96x64xbf16>
    %21 = vector.shape_cast %20 : vector<96x64xbf16> to vector<6x16x64xbf16>
    %22 = vector.extract_strided_slice %21 {offsets = [0, 1, 0], sizes = [6, 15, 64], strides = [1, 1, 1]} : vector<6x16x64xbf16> to vector<6x15x64xbf16>
    %23 = vector.extract_strided_slice %21 {offsets = [0, 15, 0], sizes = [6, 1, 64], strides = [1, 1, 1]} : vector<6x16x64xbf16> to vector<6x1x64xbf16>
    %24 = tpu.concatenate %22, %23 in 1 : vector<6x15x64xbf16>, vector<6x1x64xbf16> -> vector<6x16x64xbf16>
    %25 = vector.shape_cast %24 : vector<6x16x64xbf16> to vector<96x64xbf16>
    %26 = tpu.concatenate %19, %13, %25 in 1 : vector<96x64xbf16>, vector<96x128xbf16>, vector<96x64xbf16> -> vector<96x256xbf16>
    %27 = vector.extract_strided_slice %12 {offsets = [0, 128], sizes = [96, 128], strides = [1, 1]} : vector<96x256xbf16> to vector<96x128xbf16>
    %28 = vector.extract_strided_slice %12 {offsets = [0, 192], sizes = [96, 64], strides = [1, 1]} : vector<96x256xbf16> to vector<96x64xbf16>
    %29 = vector.shape_cast %28 : vector<96x64xbf16> to vector<6x16x64xbf16>
    %30 = vector.extract_strided_slice %29 {offsets = [0, 0, 0], sizes = [6, 1, 64], strides = [1, 1, 1]} : vector<6x16x64xbf16> to vector<6x1x64xbf16>
    %31 = vector.extract_strided_slice %29 {offsets = [0, 0, 0], sizes = [6, 15, 64], strides = [1, 1, 1]} : vector<6x16x64xbf16> to vector<6x15x64xbf16>
    %32 = tpu.concatenate %30, %31 in 1 : vector<6x1x64xbf16>, vector<6x15x64xbf16> -> vector<6x16x64xbf16>
    %33 = vector.shape_cast %32 : vector<6x16x64xbf16> to vector<96x64xbf16>
    %34 = vector.extract_strided_slice %12 {offsets = [0, 128], sizes = [96, 64], strides = [1, 1]} : vector<96x256xbf16> to vector<96x64xbf16>
    %35 = vector.shape_cast %34 : vector<96x64xbf16> to vector<6x16x64xbf16>
    %36 = vector.extract_strided_slice %35 {offsets = [0, 1, 0], sizes = [6, 15, 64], strides = [1, 1, 1]} : vector<6x16x64xbf16> to vector<6x15x64xbf16>
    %37 = vector.extract_strided_slice %35 {offsets = [0, 15, 0], sizes = [6, 1, 64], strides = [1, 1, 1]} : vector<6x16x64xbf16> to vector<6x1x64xbf16>
    %38 = tpu.concatenate %36, %37 in 1 : vector<6x15x64xbf16>, vector<6x1x64xbf16> -> vector<6x16x64xbf16>
    %39 = vector.shape_cast %38 : vector<6x16x64xbf16> to vector<96x64xbf16>
    %40 = tpu.concatenate %33, %27, %39 in 1 : vector<96x64xbf16>, vector<96x128xbf16>, vector<96x64xbf16> -> vector<96x256xbf16>
    %41 = vector.extract_strided_slice %40 {offsets = [0, 0], sizes = [64, 256], strides = [1, 1]} : vector<96x256xbf16> to vector<64x256xbf16>
    %c0_9 = arith.constant 0 : index
    %c0_10 = arith.constant 0 : index
    %c0_11 = arith.constant 0 : index
    %42 = vector.load %arg5[%c0_9, %c0_10, %c0_11] : memref<3x256x128xbf16, #tpu.memory_space<vmem>>, vector<1x256x128xbf16>
    %43 = vector.shape_cast %42 : vector<1x256x128xbf16> to vector<256x128xbf16>
    %cst_12 = arith.constant dense<0.000000e+00> : vector<64x128xf32>
    %44 = tpu.matmul %41, %43, %cst_12 {dimension_numbers = #tpu.dot_dimension_numbers<[1], [0], [0], [1], [0, 0, 1, 1], [], []>} : vector<64x256xbf16>, vector<256x128xbf16>, vector<64x128xf32> -> vector<64x128xf32>
    %45 = vector.extract_strided_slice %26 {offsets = [16, 0], sizes = [64, 256], strides = [1, 1]} : vector<96x256xbf16> to vector<64x256xbf16>
    %c1 = arith.constant 1 : index
    %c0_13 = arith.constant 0 : index
    %c0_14 = arith.constant 0 : index
    %46 = vector.load %arg5[%c1, %c0_13, %c0_14] : memref<3x256x128xbf16, #tpu.memory_space<vmem>>, vector<1x256x128xbf16>
    %47 = vector.shape_cast %46 : vector<1x256x128xbf16> to vector<256x128xbf16>
    %cst_15 = arith.constant dense<0.000000e+00> : vector<64x128xf32>
    %48 = tpu.matmul %45, %47, %cst_15 {dimension_numbers = #tpu.dot_dimension_numbers<[1], [0], [0], [1], [0, 0, 1, 1], [], []>} : vector<64x256xbf16>, vector<256x128xbf16>, vector<64x128xf32> -> vector<64x128xf32>
    %49 = arith.addf %44, %48 : vector<64x128xf32>
    %50 = vector.extract_strided_slice %40 {offsets = [16, 0], sizes = [64, 256], strides = [1, 1]} : vector<96x256xbf16> to vector<64x256xbf16>
    %c2 = arith.constant 2 : index
    %c0_16 = arith.constant 0 : index
    %c0_17 = arith.constant 0 : index
    %51 = vector.load %arg5[%c2, %c0_16, %c0_17] : memref<3x256x128xbf16, #tpu.memory_space<vmem>>, vector<1x256x128xbf16>
    %52 = vector.shape_cast %51 : vector<1x256x128xbf16> to vector<256x128xbf16>
    %cst_18 = arith.constant dense<0.000000e+00> : vector<64x128xf32>
    %53 = tpu.matmul %50, %52, %cst_18 {dimension_numbers = #tpu.dot_dimension_numbers<[1], [0], [0], [1], [0, 0, 1, 1], [], []>} : vector<64x256xbf16>, vector<256x128xbf16>, vector<64x128xf32> -> vector<64x128xf32>
    %54 = arith.addf %49, %53 : vector<64x128xf32>
    %c0_19 = arith.constant 0 : index
    %c0_20 = arith.constant 0 : index
    %55 = vector.load %arg6[%c0_19, %c0_20] : memref<1x128xf32, #tpu.memory_space<vmem>>, vector<1x128xf32>
    %56 = vector.broadcast %55 : vector<1x128xf32> to vector<64x128xf32>
    %57 = arith.addf %54, %56 : vector<64x128xf32>
    %cst_21 = arith.constant 0.000000e+00 : f32
    %58 = vector.broadcast %cst_21 : f32 to vector<64x128xf32>
    %59 = arith.cmpf oge, %57, %58 : vector<64x128xf32>
    %cst_22 = arith.constant 0.00999999977 : f32
    %60 = vector.broadcast %cst_22 : f32 to vector<64x128xf32>
    %61 = arith.mulf %60, %57 : vector<64x128xf32>
    %62 = arith.select %59, %57, %61 : vector<64x128xi1>, vector<64x128xf32>
    %63 = arith.truncf %62 : vector<64x128xf32> to vector<64x128xbf16>
    %c0_23 = arith.constant 0 : index
    %c0_24 = arith.constant 0 : index
    %c0_25 = arith.constant 0 : index
    %64 = vector.load %arg7[%c0_23, %c0_24, %c0_25] : memref<1x64x256xbf16, #tpu.memory_space<vmem>>, vector<1x64x128xbf16>
    %65 = vector.shape_cast %64 : vector<1x64x128xbf16> to vector<64x128xbf16>
    %66 = vector.shape_cast %63 : vector<64x128xbf16> to vector<1x64x128xbf16>
    tpu.vector_store %arg7[%c0_23, %c0_24, %c0_25], %66 {strides = array<i32>} : memref<1x64x256xbf16, #tpu.memory_space<vmem>>, vector<1x64x128xbf16>,
    %67 = vector.extract_strided_slice %26 {offsets = [16, 0], sizes = [64, 256], strides = [1, 1]} : vector<96x256xbf16> to vector<64x256xbf16>
    %c0_26 = arith.constant 0 : index
    %c0_27 = arith.constant 0 : index
    %c0_28 = arith.constant 0 : index
    %68 = vector.load %arg5[%c0_26, %c0_27, %c0_28] : memref<3x256x128xbf16, #tpu.memory_space<vmem>>, vector<1x256x128xbf16>
    %69 = vector.shape_cast %68 : vector<1x256x128xbf16> to vector<256x128xbf16>
    %cst_29 = arith.constant dense<0.000000e+00> : vector<64x128xf32>
    %70 = tpu.matmul %67, %69, %cst_29 {dimension_numbers = #tpu.dot_dimension_numbers<[1], [0], [0], [1], [0, 0, 1, 1], [], []>} : vector<64x256xbf16>, vector<256x128xbf16>, vector<64x128xf32> -> vector<64x128xf32>
    %71 = vector.extract_strided_slice %40 {offsets = [16, 0], sizes = [64, 256], strides = [1, 1]} : vector<96x256xbf16> to vector<64x256xbf16>
    %c1_30 = arith.constant 1 : index
    %c0_31 = arith.constant 0 : index
    %c0_32 = arith.constant 0 : index
    %72 = vector.load %arg5[%c1_30, %c0_31, %c0_32] : memref<3x256x128xbf16, #tpu.memory_space<vmem>>, vector<1x256x128xbf16>
    %73 = vector.shape_cast %72 : vector<1x256x128xbf16> to vector<256x128xbf16>
    %cst_33 = arith.constant dense<0.000000e+00> : vector<64x128xf32>
    %74 = tpu.matmul %71, %73, %cst_33 {dimension_numbers = #tpu.dot_dimension_numbers<[1], [0], [0], [1], [0, 0, 1, 1], [], []>} : vector<64x256xbf16>, vector<256x128xbf16>, vector<64x128xf32> -> vector<64x128xf32>
    %75 = arith.addf %70, %74 : vector<64x128xf32>
    %76 = vector.extract_strided_slice %26 {offsets = [32, 0], sizes = [64, 256], strides = [1, 1]} : vector<96x256xbf16> to vector<64x256xbf16>
    %c2_34 = arith.constant 2 : index
    %c0_35 = arith.constant 0 : index
    %c0_36 = arith.constant 0 : index
    %77 = vector.load %arg5[%c2_34, %c0_35, %c0_36] : memref<3x256x128xbf16, #tpu.memory_space<vmem>>, vector<1x256x128xbf16>
    %78 = vector.shape_cast %77 : vector<1x256x128xbf16> to vector<256x128xbf16>
    %cst_37 = arith.constant dense<0.000000e+00> : vector<64x128xf32>
    %79 = tpu.matmul %76, %78, %cst_37 {dimension_numbers = #tpu.dot_dimension_numbers<[1], [0], [0], [1], [0, 0, 1, 1], [], []>} : vector<64x256xbf16>, vector<256x128xbf16>, vector<64x128xf32> -> vector<64x128xf32>
    %80 = arith.addf %75, %79 : vector<64x128xf32>
    %c0_38 = arith.constant 0 : index
    %c0_39 = arith.constant 0 : index
    %81 = vector.load %arg6[%c0_38, %c0_39] : memref<1x128xf32, #tpu.memory_space<vmem>>, vector<1x128xf32>
    %82 = vector.broadcast %81 : vector<1x128xf32> to vector<64x128xf32>
    %83 = arith.addf %80, %82 : vector<64x128xf32>
    %cst_40 = arith.constant 0.000000e+00 : f32
    %84 = vector.broadcast %cst_40 : f32 to vector<64x128xf32>
    %85 = arith.cmpf oge, %83, %84 : vector<64x128xf32>
    %cst_41 = arith.constant 0.00999999977 : f32
    %86 = vector.broadcast %cst_41 : f32 to vector<64x128xf32>
    %87 = arith.mulf %86, %83 : vector<64x128xf32>
    %88 = arith.select %85, %83, %87 : vector<64x128xi1>, vector<64x128xf32>
    %89 = arith.truncf %88 : vector<64x128xf32> to vector<64x128xbf16>
    %c0_42 = arith.constant 0 : index
    %c0_43 = arith.constant 0 : index
    %c128 = arith.constant 128 : index
    %90 = vector.load %arg7[%c0_42, %c0_43, %c128] : memref<1x64x256xbf16, #tpu.memory_space<vmem>>, vector<1x64x128xbf16>
    %91 = vector.shape_cast %90 : vector<1x64x128xbf16> to vector<64x128xbf16>
    %92 = vector.shape_cast %89 : vector<64x128xbf16> to vector<1x64x128xbf16>
    tpu.vector_store %arg7[%c0_42, %c0_43, %c128], %92 {strides = array<i32>} : memref<1x64x256xbf16, #tpu.memory_space<vmem>>, vector<1x64x128xbf16>,
    return
  }
  func.func @transform_0(%arg0: i32, %arg1: i32) -> (i32, i32, i32, i32) {
    %c0_i32 = arith.constant 0 : i32
    %c0_i32_0 = arith.constant 0 : i32
    %c0_i32_1 = arith.constant 0 : i32
    return %arg0, %arg1, %c0_i32, %c0_i32_0 : i32, i32, i32, i32
  }
  func.func @transform_1(%arg0: i32, %arg1: i32) -> (i32, i32) {
    %c0_i32 = arith.constant 0 : i32
    %c0_i32_0 = arith.constant 0 : i32
    %c0_i32_1 = arith.constant 0 : i32
    return %c0_i32, %c0_i32_0 : i32, i32
  }
  func.func @transform_2(%arg0: i32, %arg1: i32) -> (i32, i32) {
    %c0_i32 = arith.constant 0 : i32
    %c0_i32_0 = arith.constant 0 : i32
    %c0_i32_1 = arith.constant 0 : i32
    return %c0_i32, %c0_i32_0 : i32, i32
  }
  func.func @transform_3(%arg0: i32, %arg1: i32) -> (i32, i32, i32) {
    %c0_i32 = arith.constant 0 : i32
    %c0_i32_0 = arith.constant 0 : i32
    %c0_i32_1 = arith.constant 0 : i32
    %c0_i32_2 = arith.constant 0 : i32
    return %c0_i32, %c0_i32_0, %c0_i32_1 : i32, i32, i32
  }
  func.func @transform_4(%arg0: i32, %arg1: i32) -> (i32, i32) {
    %c0_i32 = arith.constant 0 : i32
    %c0_i32_0 = arith.constant 0 : i32
    %c0_i32_1 = arith.constant 0 : i32
    return %c0_i32, %c0_i32_0 : i32, i32
  }
  func.func @transform_5(%arg0: i32, %arg1: i32) -> (i32, i32, i32) {
    %c0_i32 = arith.constant 0 : i32
    %c0_i32_0 = arith.constant 0 : i32
    return %arg0, %arg1, %c0_i32 : i32, i32, i32
  }
}

</mosaic_0001>

<bundles_post_ra>
// kernel: tile.18
= control target key start
LH: loop header
LB: loop body
LE: loop exit
PB: predicated region body
PF: predicated region fallthrough
CT: control target
= control target key end

     0   :  { %s22_s0 = inlined_call_operand.vmem [shape: f32[64], index: 0, kind: input, shape index: {}]   ;;  %s23_s1 = inlined_call_operand.vmem [shape: f32[2,64], index: 1, kind: output, shape index: {}]  }
   0x1   :  { %v4_v0 = vld [vmem:[%s22_s0] ss:$0 sm:$0xff] }
   0x2   :  { %5 = vst [vmem:[%s23_s1] sm:$0x3] %v4_v0 }

// kernel: tile.19
= control target key start
LH: loop header
LB: loop body
LE: loop exit
PB: predicated region body
PF: predicated region fallthrough
CT: control target
= control target key end

     0   :  { %vm7_vm0 = vcmask 523264   ;;  %vm13_vm1 = vcmask 1048064   ;;  %s39_s0 = inlined_call_operand.vmem [shape: f32[2,64], index: 0, kind: input, shape index: {}]   ;;  %s40_s1 = inlined_call_operand.vmem [shape: f32[1,128], index: 1, kind: output, shape index: {}]  }
   0x1   :  { %v4_v0 = vld [vmem:[%s39_s0] sm:$0x3]  ;;  %s22_s0 = smov 64  }
   0x2   :  { %5 = vst [vmem:[#allocation1] sm:$0x3] %v4_v0 }
   0x9   :  { %v10_v1 = vld [vmem:[#allocation1 + $0x1] sm:$0x1]   ;;  %v6_v2 = vld [vmem:[#allocation1] sm:$0x1]  }
   0xa   :  { %11 = vrot.lane.b32.xlu0 %v10_v1, %s22_s0  ;;  %8 = vst.msk [vmem:[#allocation0] sm:$0x1] %vm7_vm0, %v6_v2  }
  0x7c   :  { %v12_v3 = vpop.permute.xlu0 %11  }
  0x7d   :  { %14 = vst.msk [vmem:[#allocation0] sm:$0x1] %vm13_vm1, %v12_v3  }
  0x84   :  { %v17_v4 = vld [vmem:[#allocation0] sm:$0x1] }
  0x85   :  { %20 = vst [vmem:[%s40_s1] sm:$0x1] %v17_v4 }

// kernel: tile.13
= control target key start
LH: loop header
LB: loop body
LE: loop exit
PB: predicated region body
PF: predicated region fallthrough
CT: control target
= control target key end

     0   :  { %s22_s0 = inlined_call_operand.vmem [shape: f32[64], index: 0, kind: input, shape index: {}]   ;;  %s23_s1 = inlined_call_operand.vmem [shape: f32[4,64], index: 1, kind: output, shape index: {}]  }
   0x1   :  { %v4_v0 = vld [vmem:[%s22_s0] ss:$0 sm:$0xff] }
   0x2   :  { %5 = vst [vmem:[%s23_s1] sm:$0xf] %v4_v0 }

// kernel: tile.14
= control target key start
LH: loop header
LB: loop body
LE: loop exit
PB: predicated region body
PF: predicated region fallthrough
CT: control target
= control target key end

     0   :  { %s6_s8 = smov 3  ;;  %vm8_vm0 = vcmask 523264   ;;  %s31_s9 = smov 64   ;;  %vm15_vm1 = vcmask 1048064   ;;  %s51_s0 = inlined_call_operand.vmem [shape: f32[4,64], index: 0, kind: input, shape index: {}]   ;;  %s52_s1 = inlined_call_operand.vmem [shape: f32[1,256], index: 1, kind: output, shape index: {}]  }
   0x1   :  { %v4_v0 = vld [vmem:[%s51_s0] sm:$0xf]  ;;  %s11_s0 = smov 3 }
   0x2   :  { %5 = vst [vmem:[#allocation1] sm:$0xf] %v4_v0 }
   0x9   :  { %v12_v1 = vld [vmem:[#allocation1 + $0x1] ss:$2 sm:%s11_s0]   ;;  %v7_v2 = vld [vmem:[#allocation1] ss:$2 sm:%s6_s8]  }
   0xa   :  { %13 = vrot.lane.b32.xlu0 %v12_v1, %s31_s9  ;;  %9 = vst.msk [vmem:[#allocation0] ss:$8 sm:$0x3] %vm8_vm0, %v7_v2  }
  0x7c   :  { %v14_v3 = vpop.permute.xlu0 %13  }
  0x7d   :  { %16 = vst.msk [vmem:[#allocation0] ss:$8 sm:$0x3] %vm15_vm1, %v14_v3  }
  0x84   :  { %v19_v4 = vld [vmem:[#allocation0] sm:$0x1]  ;;  %v24_v5 = vld [vmem:[#allocation0 + $0x8] sm:$0x1] }
  0x85   :  { %22 = vst [vmem:[%s52_s1] sm:$0x1] %v19_v4 }
  0x86   :  { %29 = vst [vmem:[%s52_s1 + $0x1] sm:$0x1] %v24_v5 }

// kernel: _lambda_.1
= control target key start
LH: loop header
LB: loop body
LE: loop exit
PB: predicated region body
PF: predicated region fallthrough
CT: control target
= control target key end

     0   :  { %s3209_s18 = smov 0   ;;  %s3211_s19 = smov 0   ;;  %s4073_s0 = inlined_call_operand.vmem [shape: bf16[2,4,96,128], index: 0, kind: input, shape index: {}]   ;;  %s4074_s1 = inlined_call_operand.vmem [shape: bf16[128,256], index: 1, kind: input, shape index: {}]   ;;  %s4075_s2 = inlined_call_operand.vmem [shape: f32[1,256], index: 2, kind: input, shape index: {}]   ;;  %s4076_s3 = inlined_call_operand.vmem [shape: bf16[3,256,128], index: 3, kind: input, shape index: {}]   ;;  %s4077_s4 = inlined_call_operand.vmem [shape: f32[1,128], index: 4, kind: input, shape index: {}]   ;;  %s4078_s5 = inlined_call_operand.vmem [shape: bf16[2,256,256], index: 5, kind: output, shape index: {}]  }
   0x1   :  { %s3213_s20 = smov 0   ;;  %s3215_s21 = smov 0  }
   0x2   :  { %s3217_s22 = smov 0  }
   0x3 LB: > { %s24_s23 = sadd.s32 1, %s3168_s20  ;;  %s27_s24 = sadd.s32 1, %s3172_s21  ;;  %s3176_s22 = sphi %s3217_s22, %s15_s22   ;;  %s3172_s21 = sphi %s3215_s21, %s4086_s21   ;;  %s3168_s20 = sphi %s3213_s20, %s4085_s20   ;;  %s3164_s19 = sphi %s3211_s19, %s4084_s19   ;;  %s3160_s18 = sphi %s3209_s18, %s4083_s18  }
   0x4   : > { %p25_p0 = scmp.ge.s32.totalorder %s24_s23, 4  ;;  %p2351_p1 = scmp.ge.s32.totalorder %s3176_s22, 1 }
   0x5   : > { %p207_p2 = scmp.lt.s32.totalorder %s3176_s22, 9 }
   0x6   : > { %s4088_s23 = smov (%p25_p0, %s24_s23), 0  ;;  %s4090_s24 = smov (!%p25_p0, %s27_s24), %s3172_s21 }
   0x7   : > { %p208_p3 = pnand %p2351_p1, %p207_p2  ;;  %p29_p4 = scmp.ge.s32.totalorder %s4090_s24, 2 }
   0x8   : > { %p244_p5 = scmp.lt.s32.totalorder (!%p208_p3), %s3164_s19, 1  ;;  %p246_p6 = scmp.lt.s32.totalorder (!%p208_p3), %s3160_s18, 3 }
   0x9   : > { %s4092_s24 = smov (%p29_p4, %s4090_s24), 0  ;;  %211 = sbr.rel (%p208_p3) target bundleno = 717 (0x2cd), region = 40 }
   0xa   : > { %s3178_s27 = smov (!%p208_p3), 64   ;;  %s2353_s28 = sshll.u32 (!%p208_p3), %s3160_s18, 3 }
   0xb   : > { %p256_p7 = scmp.lt.s32.totalorder (!%p208_p3), %s2353_s28, 31 }
   0xe   : > { %v2439_v0 = vld [vmem:[%s4074_s1 + $0x70] sm:$0xf]  ;;  %v2980_v1 = vld [vmem:[%s4074_s1 + $0x74] sm:$0xf0]  ;;  %v2979_v2 = vld [vmem:[%s4074_s1 + $0x74] sm:$0xf] }
   0xf   : > { %v2440_v3 = vor.u32 %v2980_v1, %v2439_v0  ;;  %v2441_v4 = vld [vmem:[%s4074_s1 + $0x78] sm:$0xf0]  ;;  %v2431_v5 = vld [vmem:[%s4074_s1 + $0x60] sm:$0xf]  ;;  %v2978_v6 = vld [vmem:[%s4074_s1 + $0x64] sm:$0xf0] }
  0x10   : > { %v2444_v7 = vor.u32 %v2979_v2, %v2441_v4  ;;  %v2977_v8 = vld [vmem:[%s4074_s1 + $0x64] sm:$0xf]  ;;  %v2433_v9 = vld [vmem:[%s4074_s1 + $0x68] sm:$0xf0]  ;;  %v2432_v10 = vor.u32 %v2978_v6, %v2431_v5  ;;  %v2423_v12 = vld [vmem:[%s4074_s1 + $0x50] sm:$0xf] }
  0x11   : > { %414 = vmatpush.bf16.msra.mxu0 %v2440_v3  ;;  %v2436_v11 = vor.u32 %v2977_v8, %v2433_v9  ;;  %v2976_v13 = vld [vmem:[%s4074_s1 + $0x54] sm:$0xf0]  ;;  %v2975_v14 = vld [vmem:[%s4074_s1 + $0x54] sm:$0xf]  ;;  %v2425_v15 = vld [vmem:[%s4074_s1 + $0x58] sm:$0xf0] }
  0x12   : > { %453 = vmatpush.bf16.msra.mxu1 %v2444_v7  ;;  %v2424_v16 = vor.u32 %v2976_v13, %v2423_v12  ;;  %v2428_v17 = vor.u32 %v2975_v14, %v2425_v15  ;;  %v2415_v18 = vld [vmem:[%s4074_s1 + $0x40] sm:$0xf]  ;;  %v2974_v19 = vld [vmem:[%s4074_s1 + $0x44] sm:$0xf0]  ;;  %v2973_v20 = vld [vmem:[%s4074_s1 + $0x44] sm:$0xf] }
  0x13   : > { %v2417_v21 = vld [vmem:[%s4074_s1 + $0x48] sm:$0xf0]  ;;  %v2416_v22 = vor.u32 %v2974_v19, %v2415_v18  ;;  %v2407_v24 = vld [vmem:[%s4074_s1 + $0x30] sm:$0xf]  ;;  %v2972_v25 = vld [vmem:[%s4074_s1 + $0x34] sm:$0xf0] }
  0x14   : > { %v2420_v23 = vor.u32 %v2973_v20, %v2417_v21  ;;  %s4094_s19 = smov (!%p244_p5, %s3164_s19), 1  ;;  %v2971_v26 = vld [vmem:[%s4074_s1 + $0x34] sm:$0xf]  ;;  %v2409_v27 = vld [vmem:[%s4074_s1 + $0x38] sm:$0xf0]  ;;  %v2408_v28 = vor.u32 %v2972_v25, %v2407_v24  ;;  %vm674_vm6 = vcmask 1047552  }
  0x15   : > { %415 = vmatpush.bf16.msra.mxu0 %v2432_v10  ;;  %s247_s29 = scalar_select %p246_p6, %s3160_s18, 3  ;;  %v2412_v29 = vor.u32 %v2971_v26, %v2409_v27  ;;  %v2399_v30 = vld [vmem:[%s4074_s1 + $0x20] sm:$0xf]  ;;  %v2970_v31 = vld [vmem:[%s4074_s1 + $0x24] sm:$0xf0]  ;;  %vm641_vm7 = vcmask 1040384  }
  0x16   : > { %454 = vmatpush.bf16.msra.mxu1 %v2436_v11  ;;  %s3094_s9 = smul.u32 48, %s4094_s19  ;;  %v2969_v32 = vld [vmem:[%s4074_s1 + $0x24] sm:$0xf]  ;;  %v2401_v33 = vld [vmem:[%s4074_s1 + $0x28] sm:$0xf0]  ;;  %v2400_v34 = vor.u32 %v2970_v31, %v2399_v30  ;;  %s4096_s28 = smov (!%p256_p7, %s2353_s28), 31 }
  0x17   : > { %s3093_s14 = smul.u32 12, %s247_s29  ;;  %v2404_v35 = vor.u32 %v2969_v32, %v2401_v33  ;;  %v2391_v36 = vld [vmem:[%s4074_s1 + $0x10] sm:$0xf]  ;;  %v2968_v37 = vld [vmem:[%s4074_s1 + $0x14] sm:$0xf0]  ;;  %s2354_s30 = sshll.u32 %s4096_s28, 1 }
  0x18   : > { %v2967_v38 = vld [vmem:[%s4074_s1 + $0x14] sm:$0xf]  ;;  %v2393_v39 = vld [vmem:[%s4074_s1 + $0x18] sm:$0xf0]  ;;  %v2392_v40 = vor.u32 %v2968_v37, %v2391_v36  ;;  %v2383_v42 = vld [vmem:[%s4074_s1] sm:$0xf] }
  0x19   : > { %416 = vmatpush.bf16.msra.mxu0 %v2424_v16  ;;  %s250_s29 = sadd.s32 %s3094_s9, %s3093_s14  ;;  %v2396_v41 = vor.u32 %v2967_v38, %v2393_v39  ;;  %v2966_v43 = vld [vmem:[%s4074_s1 + $0x4] sm:$0xf0]  ;;  %v2965_v44 = vld [vmem:[%s4074_s1 + $0x4] sm:$0xf]  ;;  %v2385_v45 = vld [vmem:[%s4074_s1 + $0x8] sm:$0xf0] }
  0x1a   : > { %455 = vmatpush.bf16.msra.mxu1 %v2428_v17  ;;  %s2352_s11 = sshll.u32 %s250_s29, 2  ;;  %v2384_v46 = vor.u32 %v2966_v43, %v2383_v42  ;;  %v2388_v47 = vor.u32 %v2965_v44, %v2385_v45  ;;  %v292_v53 = vld [vmem:[%s4075_s2] sm:$0x3]  ;;  %vm642_vm8 = vsmask.f32 256  ;;  %s2355_s18 = sshll.u32 %s4094_s19, 6 }
  0x1b   : > { %s3349_s17 = scalar_lea.vmem %s4073_s0, %s2352_s11  ;;  %v3359_v54 = vperm.slane %v292_v53, 0  ;;  %v3361_v55 = vperm.slane %v292_v53, 1  ;;  %vm675_vm9 = vsmask.f32 7424  ;;  %vm3383_vm12 = vmand %vm641_vm7, %vm642_vm8  ;;  %s260_s7 = sadd.s32 %s2355_s18, %s2354_s30 }
  0x1c   : > { %v2959_v48 = vld [vmem:[%s3349_s17] sm:$0xff]  ;;  %v2960_v49 = vld [vmem:[%s3349_s17 + $0x8] sm:$0xff]  ;;  %v2961_v50 = vld [vmem:[%s3349_s17 + $0x10] sm:$0xff]  ;;  %s2356_s8 = sshll.u32 %s260_s7, 2 }
  0x1d   : > { %417 = vmatpush.bf16.msra.mxu0 %v2416_v22  ;;  %v2962_v51 = vld [vmem:[%s3349_s17 + $0x18] sm:$0xff]  ;;  %v2963_v52 = vld [vmem:[%s3349_s17 + $0x20] sm:$0xff]  ;;  %vm3391_vm13 = vmand %vm674_vm6, %vm675_vm9  ;;  %s3968_s11 = scalar_lea.vmem %s4078_s5, %s2356_s8 }
  0x1e   : > { %456 = vmatpush.bf16.msra.mxu1 %v2420_v23 }
  0x21   : > { %418 = vmatpush.bf16.msra.mxu0 %v2408_v28 }
  0x22   : > { %457 = vmatpush.bf16.msra.mxu1 %v2412_v29 }
  0x25   : > { %419 = vmatpush.bf16.msra.mxu0 %v2400_v34 }
  0x26   : > { %458 = vmatpush.bf16.msra.mxu1 %v2404_v35  ;;  %v3064_v35 = vld [vmem:[%s4076_s3 + $0x118] sm:$0xff] }
  0x29   : > { %420 = vmatpush.bf16.msra.mxu0 %v2392_v40 }
  0x2a   : > { %459 = vmatpush.bf16.msra.mxu1 %v2396_v41 }
  0x2d   : > { %421 = vmatpush.bf16.msra.mxu0 %v2384_v46 }
  0x2e   : > { %460 = vmatpush.bf16.msra.mxu1 %v2388_v47 }
  0x30   : > { %422 = vmatmul.bf16.vlgmr.msra.gmra.mxu0 %v2959_v48 }
  0x31   : > { %461 = vmatmul.bf16.vlgmr.msra.gmra.mxu1 %v2959_v48 }
  0x40   : > { %427 = vmatmul.bf16.gmra.mxu0 %v2960_v49 }
  0x41   : > { %466 = vmatmul.bf16.gmra.mxu1 %v2960_v49 }
  0x50   : > { %432 = vmatmul.bf16.gmra.mxu0 %v2961_v50 }
  0x51   : > { %471 = vmatmul.bf16.gmra.mxu1 %v2961_v50 }
  0x60   : > { %437 = vmatmul.bf16.gmra.mxu0 %v2962_v51 }
  0x61   : > { %476 = vmatmul.bf16.gmra.mxu1 %v2962_v51 }
  0x70   : > { %442 = vmatmul.bf16.gmra.mxu0 %v2963_v52 }
  0x71   : > { %481 = vmatmul.bf16.gmra.mxu1 %v2963_v52 }
  0xad   : > { %v423_v56 = vpop.f32.mrf.mxu0 }
  0xae   : > { %v424_v57 = vadd.f32 %v423_v56, %v3359_v54  ;;  %v462_v58 = vpop.f32.mrf.mxu1 }
  0xaf   : > { %v463_v59 = vadd.f32 %v462_v58, %v3361_v55 }
  0xb0   : > { %vm492_vm0 = vcmp.ge.f32.partialorder %v424_v57, 0.0  ;;  %v516_v60 = vmul.f32 0.01, %v424_v57 }
  0xb1   : > { %vm493_vm1 = vcmp.ge.f32.partialorder %v463_v59, 0.0  ;;  %v517_v61 = vmul.f32 0.01, %v463_v59 }
  0xb2   : > { %v540_v62 = vsel %vm492_vm0, %v424_v57, %v516_v60 }
  0xb3   : > { %v541_v63 = vsel %vm493_vm1, %v463_v59, %v517_v61 }
  0xb4   : > { %v3365_v0 = vpack.c.bf16 %v541_v63, %v540_v62 }
  0xb5   : > { %v3367_v1 = vpop.f32.mrf.mxu0 }
  0xb6   : > { %v3369_v2 = vpop.f32.mrf.mxu1 }
  0xbd   : > { %v428_v3 = vpop.f32.mrf.mxu0 }
  0xbe   : > { %v467_v4 = vpop.f32.mrf.mxu1  ;;  %v429_v5 = vadd.f32 %v428_v3, %v3359_v54  ;;  %v2964_v3 = vld [vmem:[%s3349_s17 + $0x28] sm:$0xff] }
  0xbf   : > { %v468_v6 = vadd.f32 %v467_v4, %v3361_v55  ;;  %447 = vmatmul.bf16.gmra.mxu0 %v2964_v3  ;;  %486 = vmatmul.bf16.gmra.mxu1 %v2964_v3 }
  0xc0   : > { %v520_v7 = vmul.f32 0.01, %v429_v5  ;;  %vm496_vm2 = vcmp.ge.f32.partialorder %v429_v5, 0.0 }
  0xc1   : > { %v521_v8 = vmul.f32 0.01, %v468_v6  ;;  %vm497_vm3 = vcmp.ge.f32.partialorder %v468_v6, 0.0 }
  0xc2   : > { %v544_v12 = vsel %vm496_vm2, %v429_v5, %v520_v7 }
  0xc3   : > { %v545_v13 = vsel %vm497_vm3, %v468_v6, %v521_v8 }
  0xc4   : > { %v3375_v17 = vpack.c.bf16 %v545_v13, %v544_v12 }
  0xc5   : > { %v430_v9 = vpop.f32.mrf.mxu0 }
  0xc6   : > { %v431_v10 = vadd.f32 %v430_v9, %v3359_v54  ;;  %v469_v11 = vpop.f32.mrf.mxu1  ;;  %v586_v23 = vunpack.c.l.b16 %v3375_v17 }
  0xc7   : > { %v470_v14 = vadd.f32 %v469_v11, %v3361_v55 }
  0xc8   : > { %vm498_vm4 = vcmp.ge.f32.partialorder %v431_v10, 0.0  ;;  %v522_v15 = vmul.f32 0.01, %v431_v10 }
  0xc9   : > { %vm499_vm5 = vcmp.ge.f32.partialorder %v470_v14, 0.0  ;;  %v523_v16 = vmul.f32 0.01, %v470_v14 }
  0xca   : > { %v546_v18 = vsel %vm498_vm4, %v431_v10, %v522_v15 }
  0xcb   : > { %v547_v19 = vsel %vm499_vm5, %v470_v14, %v523_v16 }
  0xcc   : > { %v3377_v20 = vpack.c.bf16 %v547_v19, %v546_v18 }
  0xcd   : > { %v433_v21 = vpop.f32.mrf.mxu0 }
  0xce   : > { %v472_v22 = vpop.f32.mrf.mxu1  ;;  %v587_v24 = vunpack.c.l.b16 %v3377_v20  ;;  %v434_v25 = vadd.f32 %v433_v21, %v3359_v54 }
  0xcf   : > { %v473_v26 = vadd.f32 %v472_v22, %v3361_v55 }
  0xd0   : > { %v596_v27 = vpack.c.b16 %v587_v24, %v586_v23  ;;  %v524_v30 = vmul.f32 0.01, %v434_v25  ;;  %vm500_vm10 = vcmp.ge.f32.partialorder %v434_v25, 0.0  ;;  %v664_v39 = vpack.c.b16 %v587_v24, %v587_v24 }
  0xd1   : > { %v525_v31 = vmul.f32 0.01, %v473_v26  ;;  %vm501_vm11 = vcmp.ge.f32.partialorder %v473_v26, 0.0 }
  0xd2   : > { %v602_v28 = vshrl.u32 %v596_v27, 16  ;;  %v605_v29 = vshll.u32 %v596_v27, 16  ;;  %v548_v41 = vsel %vm500_vm10, %v434_v25, %v524_v30  ;;  %vm722_vm10 = vcmask 523264  }
  0xd3   : > { %v549_v42 = vsel %vm501_vm11, %v473_v26, %v525_v31 }
  0xd4   : > { %v649_v32 = vrot.slane %v605_v29, 1  ;;  %v604_v33 = vrot.slane %v602_v28, 7  ;;  %v3402_v49 = vpack.c.bf16 %v549_v42, %v548_v41 }
  0xd5   : > { %v435_v34 = vpop.f32.mrf.mxu0 }
  0xd6   : > { %v436_v36 = vadd.f32 %v435_v34, %v3359_v54  ;;  %v474_v37 = vpop.f32.mrf.mxu1  ;;  %v650_v38 = vor.u32 %v649_v32, %v602_v28  ;;  %v607_v40 = vor.u32 %v605_v29, %v604_v33  ;;  %v588_v57 = vunpack.c.l.b16 %v3402_v49 }
  0xd7   : > { %v475_v43 = vadd.f32 %v474_v37, %v3361_v55  ;;  %v426_v34 = vadd.f32 %v3367_v1, %v3359_v54 }
  0xd8   : > { %vm502_vm14 = vcmp.ge.f32.partialorder %v436_v36, 0.0  ;;  %v526_v45 = vmul.f32 0.01, %v436_v36  ;;  %v677_v46 = vsel %vm3391_vm13, %v650_v38, %v664_v39  ;;  %v644_v47 = vsel %vm3383_vm12, %v3375_v17, %v607_v40 }
  0xd9   : > { %vm503_vm15 = vcmp.ge.f32.partialorder %v475_v43, 0.0  ;;  %v527_v48 = vmul.f32 0.01, %v475_v43  ;;  %712 = vrot.lane.b32.xlu1 %v677_v46, %s3178_s27  ;;  %687 = vrot.lane.b32.xlu0 %v644_v47, %s3178_s27  ;;  %vm494_vm6 = vcmp.ge.f32.partialorder %v426_v34, 0.0 }
  0xda   : > { %v550_v50 = vsel %vm502_vm14, %v436_v36, %v526_v45  ;;  %v465_v36 = vadd.f32 %v3369_v2, %v3361_v55 }
  0xdb   : > { %v551_v51 = vsel %vm503_vm15, %v475_v43, %v527_v48  ;;  %v518_v43 = vmul.f32 0.01, %v426_v34 }
  0xdc   : > { %v3404_v52 = vpack.c.bf16 %v551_v51, %v550_v50  ;;  %vm495_vm7 = vcmp.ge.f32.partialorder %v465_v36, 0.0  ;;  %v519_v45 = vmul.f32 0.01, %v465_v36 }
  0xdd   : > { %v438_v53 = vpop.f32.mrf.mxu0 }
  0xde   : > { %v477_v56 = vpop.f32.mrf.mxu1  ;;  %v589_v58 = vunpack.c.l.b16 %v3404_v52  ;;  %v439_v59 = vadd.f32 %v438_v53, %v3359_v54 }
  0xdf   : > { %v478_v60 = vadd.f32 %v477_v56, %v3361_v55 }
  0xe0   : > { %v597_v61 = vpack.c.b16 %v589_v58, %v588_v57  ;;  %v528_v4 = vmul.f32 0.01, %v439_v59  ;;  %vm504_vm0 = vcmp.ge.f32.partialorder %v439_v59, 0.0  ;;  %v665_v13 = vpack.c.b16 %v589_v58, %v589_v58 }
  0xe1   : > { %697 = vrot.lane.b32.xlu0 %v596_v27, %s3178_s27  ;;  %v529_v5 = vmul.f32 0.01, %v478_v60  ;;  %vm505_vm1 = vcmp.ge.f32.partialorder %v478_v60, 0.0 }
  0xe2   : > { %699 = vrot.lane.b32.xlu2 %v597_v61, %s3178_s27  ;;  %v609_v62 = vshrl.u32 %v597_v61, 16  ;;  %v612_v63 = vshll.u32 %v597_v61, 16  ;;  %v552_v14 = vsel %vm504_vm0, %v439_v59, %v528_v4  ;;  %v542_v61 = vsel %vm494_vm6, %v426_v34, %v518_v43 }
  0xe3   : > { %v553_v15 = vsel %vm505_vm1, %v478_v60, %v529_v5  ;;  %v860_v43 = vrot.slane %v3404_v52, 4 }
  0xe4   : > { %v611_v6 = vrot.slane %v609_v62, 7  ;;  %v651_v7 = vrot.slane %v612_v63, 1  ;;  %v3421_v23 = vpack.c.bf16 %v553_v15, %v552_v14  ;;  %v858_v14 = vrot.slane %v3377_v20, 4 }
  0xe5   : > { %v440_v8 = vpop.f32.mrf.mxu0 }
  0xe6   : > { %v441_v9 = vadd.f32 %v440_v8, %v3359_v54  ;;  %v479_v10 = vpop.f32.mrf.mxu1  ;;  %v614_v11 = vor.u32 %v612_v63, %v611_v6  ;;  %v652_v12 = vor.u32 %v651_v7, %v609_v62  ;;  %v590_v29 = vunpack.c.l.b16 %v3421_v23 }
  0xe7   : > { %v480_v16 = vadd.f32 %v479_v10, %v3361_v55  ;;  %v543_v62 = vsel %vm495_vm7, %v465_v36, %v519_v45 }
  0xe8   : > { %vm506_vm2 = vcmp.ge.f32.partialorder %v441_v9, 0.0  ;;  %v530_v18 = vmul.f32 0.01, %v441_v9  ;;  %v645_v19 = vsel %vm3383_vm12, %v3402_v49, %v614_v11  ;;  %v678_v21 = vsel %vm3391_vm13, %v652_v12, %v665_v13 }
  0xe9   : > { %vm507_vm3 = vcmp.ge.f32.partialorder %v480_v16, 0.0  ;;  %v531_v22 = vmul.f32 0.01, %v480_v16  ;;  %689 = vrot.lane.b32.xlu1 %v645_v19, %s3178_s27  ;;  %v565_v6 = vpack.c.bf16 %v543_v62, %v542_v61  ;;  %v857_v19 = vrot.slane %v3375_v17, 4  ;;  %v3003_v61 = vld [vmem:[%s4076_s3 + $0xb0] sm:$0xff] }
  0xea   : > { %v554_v24 = vsel %vm506_vm2, %v441_v9, %v530_v18  ;;  %714 = vrot.lane.b32.xlu2 %v678_v21, %s3178_s27  ;;  %v855_v18 = vrot.slane %v3365_v0, 4  ;;  %v3011_v62 = vld [vmem:[%s4076_s3 + $0xf0] sm:$0xff] }
  0xeb   : > { %v555_v25 = vsel %vm507_vm3, %v480_v16, %v531_v22  ;;  %v856_v12 = vrot.slane %v565_v6, 4 }
  0xec   : > { %v3424_v26 = vpack.c.bf16 %v555_v25, %v554_v24  ;;  %v868_v25 = vunpack.c.l.b16 %v858_v14 }
  0xed   : > { %v443_v27 = vpop.f32.mrf.mxu0  ;;  %v866_v24 = vunpack.c.l.b16 %v856_v12 }
  0xee   : > { %v482_v28 = vpop.f32.mrf.mxu1  ;;  %v591_v30 = vunpack.c.l.b16 %v3424_v26  ;;  %v444_v31 = vadd.f32 %v443_v27, %v3359_v54  ;;  %v862_v14 = vrot.slane %v3424_v26, 4 }
  0xef   : > { %v483_v32 = vadd.f32 %v482_v28, %v3361_v55 }
  0xf0   : > { %v598_v33 = vpack.c.b16 %v591_v30, %v590_v29  ;;  %v532_v39 = vmul.f32 0.01, %v444_v31  ;;  %vm508_vm4 = vcmp.ge.f32.partialorder %v444_v31, 0.0  ;;  %v666_v2 = vpack.c.b16 %v591_v30, %v591_v30 }
  0xf1   : > { %v533_v40 = vmul.f32 0.01, %v483_v32  ;;  %vm509_vm5 = vcmp.ge.f32.partialorder %v483_v32, 0.0  ;;  %v865_v30 = vunpack.c.l.b16 %v855_v18 }
  0xf2   : > { %v619_v37 = vshll.u32 %v598_v33, 16  ;;  %701 = vrot.lane.b32.xlu1 %v598_v33, %s3178_s27  ;;  %v616_v38 = vshrl.u32 %v598_v33, 16  ;;  %v556_v51 = vsel %vm508_vm4, %v444_v31, %v532_v39  ;;  %v867_v31 = vunpack.c.l.b16 %v857_v19 }
  0xf3   : > { %v557_v53 = vsel %vm509_vm5, %v483_v32, %v533_v40  ;;  %v875_v34 = vpack.c.b16 %v866_v24, %v865_v30  ;;  %v935_v39 = vunpack.c.h.b16 %v3365_v0  ;;  %v861_v19 = vrot.slane %v3421_v23, 4 }
  0xf4   : > { %v653_v41 = vrot.slane %v619_v37, 1  ;;  %v618_v42 = vrot.slane %v616_v38, 7  ;;  %v3446_v63 = vpack.c.bf16 %v557_v53, %v556_v51  ;;  %v876_v36 = vpack.c.b16 %v868_v25, %v867_v31  ;;  %v2999_v31 = vld [vmem:[%s4076_s3 + $0x90] sm:$0xff] }
  0xf5   : > { %v445_v46 = vpop.f32.mrf.mxu0  ;;  %v920_v53 = vpack.c.b16 %v866_v24, %v866_v24  ;;  %v3000_v24 = vld [vmem:[%s4076_s3 + $0x98] sm:$0xff] }
  0xf6   : > { %v446_v1 = vadd.f32 %v445_v46, %v3359_v54  ;;  %v484_v47 = vpop.f32.mrf.mxu1  ;;  %v654_v48 = vor.u32 %v653_v41, %v616_v38  ;;  %v621_v50 = vor.u32 %v619_v37, %v618_v42  ;;  %v592_v7 = vunpack.c.l.b16 %v3446_v63 }
  0xf7   : > { %v485_v56 = vadd.f32 %v484_v47, %v3361_v55  ;;  %v943_v9 = vunpack.c.h.b16 %v3446_v63  ;;  %v936_v37 = vunpack.c.h.b16 %v565_v6  ;;  %v883_v38 = vshll.u32 %v875_v34, 16  ;;  %v3004_v47 = vld [vmem:[%s4076_s3 + $0xb8] sm:$0xff] }
  0xf8   : > { %vm510_vm8 = vcmp.ge.f32.partialorder %v446_v1, 0.0  ;;  %v534_v57 = vmul.f32 0.01, %v446_v1  ;;  %v679_v58 = vsel %vm3391_vm13, %v654_v48, %v666_v2  ;;  %v646_v59 = vsel %vm3383_vm12, %v3421_v23, %v621_v50  ;;  %v3012_v48 = vld [vmem:[%s4076_s3 + $0xf8] sm:$0xff]  ;;  %1171 = vmatpush.bf16.msra.mxu2 %v3004_v47 }
  0xf9   : > { %vm511_vm9 = vcmp.ge.f32.partialorder %v485_v56, 0.0  ;;  %v535_v60 = vmul.f32 0.01, %v485_v56  ;;  %716 = vrot.lane.b32.xlu2 %v679_v58, %s3178_s27  ;;  %691 = vrot.lane.b32.xlu0 %v646_v59, %s3178_s27  ;;  %v890_v40 = vshll.u32 %v876_v36, 16  ;;  %v945_v41 = vpack.c.b16 %v936_v37, %v935_v39  ;;  %v3006_v39 = vld [vmem:[%s4076_s3 + $0xc8] sm:$0xff] }
  0xfa   : > { %v558_v3 = vsel %vm510_vm8, %v446_v1, %v534_v57  ;;  %v885_v42 = vrot.slane %v883_v38, 1  ;;  %v881_v46 = vshrl.u32 %v875_v34, 16  ;;  %v859_v1 = vrot.slane %v3402_v49, 4  ;;  %1200 = vmatpush.bf16.msra.mxu3 %v3012_v48  ;;  %v2998_v38 = vld [vmem:[%s4076_s3 + $0x88] sm:$0xff] }
  0xfb   : > { %v559_v4 = vsel %vm511_vm9, %v485_v56, %v535_v60  ;;  %v892_v45 = vrot.slane %v890_v40, 1  ;;  %v888_v2 = vshrl.u32 %v876_v36, 16  ;;  %v921_v57 = vpack.c.b16 %v868_v25, %v868_v25  ;;  %v3008_v25 = vld [vmem:[%s4076_s3 + $0xd8] sm:$0xff] }
  0xfc   : > { %v3448_v5 = vpack.c.bf16 %v559_v4, %v558_v3  ;;  %v886_v50 = vor.u32 %v885_v42, %v881_v46  ;;  %v869_v56 = vunpack.c.l.b16 %v859_v1  ;;  %v938_v3 = vunpack.c.h.b16 %v3377_v20  ;;  %1172 = vmatpush.bf16.msra.mxu2 %v3003_v61  ;;  %v3019_v61 = vld [vmem:[%s4076_s3 + $0x130] sm:$0xff] }
  0xfd   : > { %v893_v51 = vor.u32 %v892_v45, %v888_v2  ;;  %v940_v4 = vunpack.c.h.b16 %v3404_v52  ;;  %v942_v37 = vunpack.c.h.b16 %v3424_v26 }
  0xfe   : > { %v593_v8 = vunpack.c.l.b16 %v3448_v5  ;;  %v944_v10 = vunpack.c.h.b16 %v3448_v5  ;;  %v930_v58 = vsel %vm3391_vm13, %v886_v50, %v920_v53  ;;  %1201 = vmatpush.bf16.msra.mxu3 %v3011_v62  ;;  %v2988_v50 = vld [vmem:[%s4076_s3 + $0x38] sm:$0xff]  ;;  %v3027_v62 = vld [vmem:[%s4076_s3 + $0x170] sm:$0xff] }
  0xff   : > { %v931_v60 = vsel %vm3391_vm13, %v893_v51, %v921_v57 }
 0x100   : > { %v599_v11 = vpack.c.b16 %v593_v8, %v592_v7  ;;  %v3454_v13 = vpack.c.b16 %v944_v10, %v943_v9  ;;  %v667_v28 = vpack.c.b16 %v593_v8, %v593_v8  ;;  %v3002_v7 = vld [vmem:[%s4076_s3 + $0xa8] sm:$0xff]  ;;  %v937_v9 = vunpack.c.h.b16 %v3375_v17 }
 0x101   : > { %v3010_v8 = vld [vmem:[%s4076_s3 + $0xe8] sm:$0xff]  ;;  %v939_v10 = vunpack.c.h.b16 %v3402_v49  ;;  %1173 = vmatpush.bf16.msra.mxu2 %v3002_v7 }
 0x102   : > { %v626_v15 = vshll.u32 %v599_v11, 16  ;;  %703 = vrot.lane.b32.xlu1 %v599_v11, %s3178_s27  ;;  %v623_v16 = vshrl.u32 %v599_v11, 16  ;;  %v946_v11 = vpack.c.b16 %v938_v3, %v937_v9  ;;  %1202 = vmatpush.bf16.msra.mxu3 %v3010_v8  ;;  %v2985_v3 = vld [vmem:[%s4076_s3 + $0x20] sm:$0xff]  ;;  %v3026_v7 = vld [vmem:[%s4076_s3 + $0x168] sm:$0xff] }
 0x104   : > { %v655_v21 = vrot.slane %v626_v15, 1  ;;  %v625_v22 = vrot.slane %v623_v16, 7 }
 0x106   : > { %v656_v27 = vor.u32 %v655_v21, %v623_v16  ;;  %v628_v29 = vor.u32 %v626_v15, %v625_v22  ;;  %v864_v15 = vrot.slane %v3448_v5, 4  ;;  %v3009_v16 = vld [vmem:[%s4076_s3 + $0xe0] sm:$0xff]  ;;  %v863_v21 = vrot.slane %v3446_v63, 4 }
 0x107   : > { %1203 = vmatpush.bf16.msra.mxu3 %v3009_v16  ;;  %v872_v22 = vunpack.c.l.b16 %v862_v14  ;;  %v2992_v14 = vld [vmem:[%s4076_s3 + $0x58] sm:$0xff]  ;;  %v2991_v16 = vld [vmem:[%s4076_s3 + $0x50] sm:$0xff] }
 0x108   : > { %v680_v32 = vsel %vm3391_vm13, %v656_v27, %v667_v28  ;;  %v647_v33 = vsel %vm3383_vm12, %v3446_v63, %v628_v29  ;;  %v874_v27 = vunpack.c.l.b16 %v864_v15  ;;  %v871_v29 = vunpack.c.l.b16 %v861_v19 }
 0x109   : > { %718 = vrot.lane.b32.xlu2 %v680_v32, %s3178_s27  ;;  %693 = vrot.lane.b32.xlu0 %v647_v33, %s3178_s27  ;;  %v873_v30 = vunpack.c.l.b16 %v863_v21  ;;  %v3007_v32 = vld [vmem:[%s4076_s3 + $0xd0] sm:$0xff]  ;;  %v923_v51 = vpack.c.b16 %v872_v22, %v872_v22  ;;  %v3025_v21 = vld [vmem:[%s4076_s3 + $0x160] sm:$0xff] }
 0x10a   : > { %762 = vrot.lane.b32.xlu1 %v565_v6, %s3178_s27  ;;  %v878_v34 = vpack.c.b16 %v872_v22, %v871_v29  ;;  %v924_v53 = vpack.c.b16 %v874_v27, %v874_v27 }
 0x10b   : > { %1204 = vmatpush.bf16.msra.mxu3 %v3008_v25  ;;  %v879_v36 = vpack.c.b16 %v874_v27, %v873_v30  ;;  %v3016_v30 = vld [vmem:[%s4076_s3 + $0x118] sm:$0xff] }
 0x10c   : > { %v904_v40 = vshll.u32 %v878_v34, 16  ;;  %v902_v1 = vshrl.u32 %v878_v34, 16  ;;  %v3015_v34 = vld [vmem:[%s4076_s3 + $0x110] sm:$0xff] }
 0x10d   : > { %v909_v47 = vshrl.u32 %v879_v36, 16 }
 0x10e   : > { %v906_v45 = vrot.slane %v904_v40, 1 }
 0x10f   : > { %1205 = vmatpush.bf16.msra.mxu3 %v3007_v32 }
 0x110   : > { %v907_v48 = vor.u32 %v906_v45, %v902_v1  ;;  %v2990_v45 = vld [vmem:[%s4076_s3 + $0x48] sm:$0xff] }
 0x111   : > { %760 = vrot.lane.b32.xlu0 %v3365_v0, %s3178_s27  ;;  %950 = vrot.lane.b32.xlu2 %v945_v41, %s3178_s27  ;;  %v870_v0 = vunpack.c.l.b16 %v860_v43  ;;  %v941_v41 = vunpack.c.h.b16 %v3421_v23  ;;  %v3005_v43 = vld [vmem:[%s4076_s3 + $0xc0] sm:$0xff] }
 0x112   : > { %764 = vrot.lane.b32.xlu1 %v3375_v17, %s3178_s27  ;;  %v3001_v17 = vld [vmem:[%s4076_s3 + $0xa0] sm:$0xff] }
 0x113   : > { %v877_v59 = vpack.c.b16 %v870_v0, %v869_v56  ;;  %1174 = vmatpush.bf16.msra.mxu2 %v3001_v17  ;;  %v922_v28 = vpack.c.b16 %v870_v0, %v870_v0  ;;  %v948_v42 = vpack.c.b16 %v942_v37, %v941_v41  ;;  %1206 = vmatpush.bf16.msra.mxu3 %v3006_v39  ;;  %v2996_v0 = vld [vmem:[%s4076_s3 + $0x78] sm:$0xff]  ;;  %v2983_v17 = vld [vmem:[%s4076_s3 + $0x10] sm:$0xff] }
 0x114   : > { %v933_v56 = vsel %vm3391_vm13, %v907_v48, %v923_v51  ;;  %v2981_v48 = vld [vmem:[%s4076_s3] sm:$0xff] }
 0x115   : > { %v897_v6 = vshll.u32 %v877_v59, 16  ;;  %v895_v18 = vshrl.u32 %v877_v59, 16  ;;  %v2995_v59 = vld [vmem:[%s4076_s3 + $0x70] sm:$0xff] }
 0x117   : > { %v899_v12 = vrot.slane %v897_v6, 1  ;;  %1175 = vmatpush.bf16.msra.mxu2 %v3000_v24  ;;  %1207 = vmatpush.bf16.msra.mxu3 %v3005_v43  ;;  %v3018_v6 = vld [vmem:[%s4076_s3 + $0x128] sm:$0xff] }
 0x118   : > { %v2982_v43 = vld [vmem:[%s4076_s3 + $0x8] sm:$0xff] }
 0x119   : > { %766 = vrot.lane.b32.xlu2 %v3377_v20, %s3178_s27  ;;  %965 = vrot.lane.b32.xlu0 %v930_v58, %s3178_s27  ;;  %v947_v20 = vpack.c.b16 %v940_v4, %v939_v10  ;;  %v2987_v58 = vld [vmem:[%s4076_s3 + $0x30] sm:$0xff]  ;;  %v2993_v4 = vld [vmem:[%s4076_s3 + $0x60] sm:$0xff] }
 0x11a   : > { %967 = vrot.lane.b32.xlu1 %v931_v60, %s3178_s27  ;;  %v2994_v60 = vld [vmem:[%s4076_s3 + $0x68] sm:$0xff] }
 0x11b   : > { %1176 = vmatpush.bf16.msra.mxu2 %v2999_v31  ;;  %1354 = vmatpush.bf16.msrb.mxu3 %v2996_v0  ;;  %v3024_v31 = vld [vmem:[%s4076_s3 + $0x158] sm:$0xff] }
 0x11f   : > { %1177 = vmatpush.bf16.msra.mxu2 %v2998_v38  ;;  %1355 = vmatpush.bf16.msrb.mxu3 %v2995_v59 }
 0x121   : > { %768 = vrot.lane.b32.xlu2 %v3402_v49, %s3178_s27  ;;  %952 = vrot.lane.b32.xlu0 %v946_v11, %s3178_s27  ;;  %v900_v49 = vor.u32 %v899_v12, %v895_v18  ;;  %v2984_v12 = vld [vmem:[%s4076_s3 + $0x18] sm:$0xff]  ;;  %v3017_v18 = vld [vmem:[%s4076_s3 + $0x120] sm:$0xff] }
 0x122   : > { %954 = vrot.lane.b32.xlu1 %v947_v20, %s3178_s27 }
 0x123   : > { %v932_v33 = vsel %vm3391_vm13, %v900_v49, %v922_v28  ;;  %1356 = vmatpush.bf16.msrb.mxu3 %v2994_v60 }
 0x127   : > { %1357 = vmatpush.bf16.msrb.mxu3 %v2993_v4 }
 0x129   : > { %969 = vrot.lane.b32.xlu2 %v932_v33, %s3178_s27  ;;  %770 = vrot.lane.b32.xlu0 %v3404_v52, %s3178_s27  ;;  %v911_v52 = vshll.u32 %v879_v36, 16  ;;  %v3023_v36 = vld [vmem:[%s4076_s3 + $0x150] sm:$0xff] }
 0x12a   : > { %774 = vrot.lane.b32.xlu1 %v3424_v26, %s3178_s27  ;;  %v2997_v26 = vld [vmem:[%s4076_s3 + $0x80] sm:$0xff] }
 0x12b   : > { %v913_v46 = vrot.slane %v911_v52, 1  ;;  %1178 = vmatpush.bf16.msra.mxu2 %v2997_v26  ;;  %1358 = vmatpush.bf16.msrb.mxu3 %v2992_v14 }
 0x12d   : > { %v914_v2 = vor.u32 %v913_v46, %v909_v47 }
 0x12f   : > { %1325 = vmatpush.bf16.msrb.mxu2 %v2988_v50  ;;  %v934_v57 = vsel %vm3391_vm13, %v914_v2, %v924_v53  ;;  %1359 = vmatpush.bf16.msrb.mxu3 %v2991_v16  ;;  %v2989_v2 = vld [vmem:[%s4076_s3 + $0x40] sm:$0xff]  ;;  %v3022_v50 = vld [vmem:[%s4076_s3 + $0x148] sm:$0xff] }
 0x130   : > { %v3021_v53 = vld [vmem:[%s4076_s3 + $0x140] sm:$0xff] }
 0x131   : > { %956 = vrot.lane.b32.xlu2 %v948_v42, %s3178_s27  ;;  %772 = vrot.lane.b32.xlu0 %v3421_v23, %s3178_s27  ;;  %v3020_v23 = vld [vmem:[%s4076_s3 + $0x138] sm:$0xff] }
 0x132   : > { %776 = vrot.lane.b32.xlu1 %v3446_v63, %s3178_s27  ;;  %v3028_v63 = vld [vmem:[%s4076_s3 + $0x178] sm:$0xff]  ;;  %1512 = vmatpush.bf16.msrb.mxu0 %v3020_v23  ;;  %v3013_v23 = vld [vmem:[%s4076_s3 + $0x100] sm:$0xff] }
 0x133   : > { %1541 = vmatpush.bf16.msrb.mxu1 %v3028_v63  ;;  %1326 = vmatpush.bf16.msrb.mxu2 %v2987_v58 }
 0x134   : > { %1360 = vmatpush.bf16.msrb.mxu3 %v2990_v45 }
 0x136   : > { %1513 = vmatpush.bf16.msrb.mxu0 %v3019_v61 }
 0x137   : > { %1542 = vmatpush.bf16.msrb.mxu1 %v3027_v62  ;;  %v3052_v62 = vld [vmem:[%s4076_s3 + $0xb8] sm:$0xff] }
 0x138   : > { %1361 = vmatpush.bf16.msrb.mxu3 %v2989_v2 }
 0x139   : > { %778 = vrot.lane.b32.xlu2 %v3448_v5, %s3178_s27  ;;  %971 = vrot.lane.b32.xlu0 %v933_v56, %s3178_s27  ;;  %v2986_v5 = vld [vmem:[%s4076_s3 + $0x28] sm:$0xff] }
 0x13a   : > { %973 = vrot.lane.b32.xlu1 %v934_v57, %s3178_s27  ;;  %1327 = vmatpush.bf16.msrb.mxu2 %v2986_v5 }
 0x13b   : > { %1514 = vmatpush.bf16.msrb.mxu0 %v3018_v6  ;;  %1543 = vmatpush.bf16.msrb.mxu1 %v3026_v7 }
 0x13c   : > { %v700_v8 = vpop.permute.xlu2 %699  ;;  %v448_v49 = vpop.f32.mrf.mxu0 }
 0x13d   : > { %v487_v22 = vpop.f32.mrf.mxu1  ;;  %v449_v24 = vadd.f32 %v448_v49, %v3359_v54  ;;  %v3059_v49 = vld [vmem:[%s4076_s3 + $0xf0] sm:$0xff] }
 0x13e   : > { %1328 = vmatpush.bf16.msrb.mxu2 %v2985_v3  ;;  %v488_v25 = vadd.f32 %v487_v22, %v3361_v55 }
 0x13f   : > { %1515 = vmatpush.bf16.msrb.mxu0 %v3017_v18  ;;  %1544 = vmatpush.bf16.msrb.mxu1 %v3025_v21  ;;  %v536_v32 = vmul.f32 0.01, %v449_v24  ;;  %vm512_vm11 = vcmp.ge.f32.partialorder %v449_v24, 0.0  ;;  %v3051_v21 = vld [vmem:[%s4076_s3 + $0xb0] sm:$0xff] }
 0x140   : > { %v537_v33 = vmul.f32 0.01, %v488_v25  ;;  %vm513_vm14 = vcmp.ge.f32.partialorder %v488_v25, 0.0 }
 0x141   : > { %958 = vrot.lane.b32.xlu0 %v3454_v13, %s3178_s27  ;;  %v560_v37 = vsel %vm512_vm11, %v449_v24, %v536_v32 }
 0x142   : > { %1329 = vmatpush.bf16.msrb.mxu2 %v2984_v12  ;;  %v561_v40 = vsel %vm513_vm14, %v488_v25, %v537_v33 }
 0x143   : > { %1516 = vmatpush.bf16.msrb.mxu0 %v3016_v30  ;;  %1545 = vmatpush.bf16.msrb.mxu1 %v3024_v31  ;;  %v3666_v1 = vpack.c.bf16 %v561_v40, %v560_v37 }
 0x144   : > { %v715_v15 = vpop.permute.xlu2 %714  ;;  %v450_v38 = vpop.f32.mrf.mxu0 }
 0x145   : > { %v3642_v29 = vsel %vm722_vm10, %v700_v8, %v715_v15  ;;  %v489_v39 = vpop.f32.mrf.mxu1  ;;  %v451_v41 = vadd.f32 %v450_v38, %v3359_v54  ;;  %v594_v56 = vunpack.c.l.b16 %v3666_v1 }
 0x146   : > { %1330 = vmatpush.bf16.msrb.mxu2 %v2983_v17  ;;  %v490_v52 = vadd.f32 %v489_v39, %v3361_v55  ;;  %v3014_v55 = vld [vmem:[%s4076_s3 + $0x108] sm:$0xff] }
 0x147   : > { %1517 = vmatpush.bf16.msrb.mxu0 %v3015_v34  ;;  %1546 = vmatpush.bf16.msrb.mxu1 %v3023_v36  ;;  %vm514_vm15 = vcmp.ge.f32.partialorder %v451_v41, 0.0  ;;  %v538_v46 = vmul.f32 0.01, %v451_v41 }
 0x148   : > { %vm515_vm0 = vcmp.ge.f32.partialorder %v490_v52, 0.0  ;;  %v539_v54 = vmul.f32 0.01, %v490_v52 }
 0x149   : > { %v562_v47 = vsel %vm514_vm15, %v451_v41, %v538_v46 }
 0x14a   : > { %1331 = vmatpush.bf16.msrb.mxu2 %v2982_v43  ;;  %v563_v0 = vsel %vm515_vm0, %v490_v52, %v539_v54 }
 0x14b   : > { %v688_v13 = vpop.permute.xlu0 %687  ;;  %v713_v9 = vpop.permute.xlu1 %712  ;;  %1518 = vmatpush.bf16.msrb.mxu0 %v3014_v55  ;;  %v575_v63 = vpack.c.bf16 %v563_v0, %v562_v47  ;;  %1547 = vmatpush.bf16.msrb.mxu1 %v3022_v50  ;;  %v3049_v47 = vld [vmem:[%s4076_s3 + $0xa0] sm:$0xff] }
 0x14d   : > { %v3687_v57 = vunpack.c.l.b16 %v575_v63 }
 0x14e   : > { %1332 = vmatpush.bf16.msrb.mxu2 %v2981_v48  ;;  %v3057_v48 = vld [vmem:[%s4076_s3 + $0xe0] sm:$0xff] }
 0x14f   : > { %1519 = vmatpush.bf16.msrb.mxu0 %v3013_v23  ;;  %v600_v60 = vpack.c.b16 %v3687_v57, %v594_v56  ;;  %1548 = vmatpush.bf16.msrb.mxu1 %v3021_v53  ;;  %v668_v45 = vpack.c.b16 %v3687_v57, %v3687_v57  ;;  %v3044_v57 = vld [vmem:[%s4076_s3 + $0x78] sm:$0xff] }
 0x151   : > { %705 = vrot.lane.b32.xlu0 %v600_v60, %s3178_s27  ;;  %v630_v16 = vshrl.u32 %v600_v60, 16  ;;  %v633_v31 = vshll.u32 %v600_v60, 16  ;;  %v3056_v60 = vld [vmem:[%s4076_s3 + $0xd8] sm:$0xff] }
 0x153   : > { %v698_v10 = vpop.permute.xlu0 %697  ;;  %v717_v27 = vpop.permute.xlu2 %716  ;;  %v632_v30 = vrot.slane %v630_v16, 7  ;;  %v657_v40 = vrot.slane %v633_v31, 1  ;;  %1973 = vmatpush.bf16.msra.mxu1 %v3044_v57  ;;  %v3030_v57 = vld [vmem:[%s4076_s3 + $0x8] sm:$0xff] }
 0x154   : > { %v3611_v11 = vsel %vm722_vm10, %v688_v13, %v698_v10  ;;  %v3614_v20 = vsel %vm722_vm10, %v698_v10, %v713_v9  ;;  %v3060_v13 = vld [vmem:[%s4076_s3 + $0xf8] sm:$0xff] }
 0x155   : > { %1179 = vmatmul.bf16.vlgmr.msra.gmra.mxu2 %v3611_v11  ;;  %1208 = vmatmul.bf16.vlgmr.msra.gmra.mxu3 %v3614_v20  ;;  %v635_v36 = vor.u32 %v633_v31, %v632_v30  ;;  %v658_v54 = vor.u32 %v657_v40, %v630_v16  ;;  %v3033_v40 = vld [vmem:[%s4076_s3 + $0x20] sm:$0xff] }
 0x156   : > { %1790 = vmatpush.bf16.msra.mxu2 %v3052_v62  ;;  %1819 = vmatpush.bf16.msra.mxu3 %v3060_v13  ;;  %v3036_v13 = vld [vmem:[%s4076_s3 + $0x38] sm:$0xff] }
 0x157   : > { %v648_v43 = vsel %vm3383_vm12, %v3666_v1, %v635_v36  ;;  %v681_v1 = vsel %vm3391_vm13, %v658_v54, %v668_v45  ;;  %1944 = vmatpush.bf16.msra.mxu0 %v3036_v13  ;;  %v3032_v45 = vld [vmem:[%s4076_s3 + $0x18] sm:$0xff]  ;;  %v3053_v54 = vld [vmem:[%s4076_s3 + $0xc0] sm:$0xff] }
 0x158   : > { %695 = vrot.lane.b32.xlu2 %v648_v43, %s3178_s27  ;;  %720 = vrot.lane.b32.xlu1 %v681_v1, %s3178_s27  ;;  %v3068_v13 = vld [vmem:[%s4076_s3 + $0x138] sm:$0xff] }
 0x15a   : > { %1791 = vmatpush.bf16.msra.mxu2 %v3051_v21  ;;  %1820 = vmatpush.bf16.msra.mxu3 %v3059_v49  ;;  %v3034_v21 = vld [vmem:[%s4076_s3 + $0x28] sm:$0xff] }
 0x15b   : > { %v690_v19 = vpop.permute.xlu1 %689 }
 0x15c   : > { %v3639_v28 = vsel %vm722_vm10, %v690_v19, %v700_v8 }
 0x163   : > { %v719_v42 = vpop.permute.xlu2 %718 }
 0x164   : > { %v702_v26 = vpop.permute.xlu1 %701 }
 0x165   : > { %1184 = vmatmul.bf16.gmra.mxu2 %v3639_v28  ;;  %1213 = vmatmul.bf16.gmra.mxu3 %v3642_v29  ;;  %v3693_v5 = vsel %vm722_vm10, %v702_v26, %v717_v27 }
 0x16b   : > { %v692_v51 = vpop.permute.xlu0 %691  ;;  %v3698_v61 = vpop.permute.xlu2 %950 }
 0x16c   : > { %v3690_v59 = vsel %vm722_vm10, %v692_v51, %v702_v26  ;;  %v3058_v26 = vld [vmem:[%s4076_s3 + $0xe8] sm:$0xff] }
 0x16d   : > { %1821 = vmatpush.bf16.msra.mxu3 %v3058_v26  ;;  %v3039_v26 = vld [vmem:[%s4076_s3 + $0x50] sm:$0xff] }
 0x171   : > { %1822 = vmatpush.bf16.msra.mxu3 %v3057_v48  ;;  %v3031_v48 = vld [vmem:[%s4076_s3 + $0x10] sm:$0xff] }
 0x173   : > { %v767_v6 = vpop.permute.xlu2 %766 }
 0x174   : > { %v704_v58 = vpop.permute.xlu1 %703  ;;  %v783_v8 = vrot.slane %v767_v6, 4 }
 0x175   : > { %1189 = vmatmul.bf16.gmra.mxu2 %v3690_v59  ;;  %1218 = vmatmul.bf16.gmra.mxu3 %v3693_v5  ;;  %v3711_v15 = vsel %vm722_vm10, %v704_v58, %v719_v42  ;;  %v3050_v42 = vld [vmem:[%s4076_s3 + $0xa8] sm:$0xff] }
 0x176   : > { %v798_v22 = vunpack.c.l.b16 %v783_v8  ;;  %1792 = vmatpush.bf16.msra.mxu2 %v3050_v42  ;;  %1823 = vmatpush.bf16.msra.mxu3 %v3056_v60  ;;  %v3042_v8 = vld [vmem:[%s4076_s3 + $0x68] sm:$0xff] }
 0x17a   : > { %1793 = vmatpush.bf16.msra.mxu2 %v3049_v47 }
 0x17b   : > { %v694_v3 = vpop.permute.xlu0 %693  ;;  %v3741_v2 = vpop.permute.xlu2 %768 }
 0x17c   : > { %v763_v4 = vpop.permute.xlu1 %762  ;;  %v3708_v14 = vsel %vm722_vm10, %v694_v3, %v704_v58  ;;  %v3048_v58 = vld [vmem:[%s4076_s3 + $0x98] sm:$0xff]  ;;  %v784_v62 = vrot.slane %v3741_v2, 4  ;;  %v3047_v3 = vld [vmem:[%s4076_s3 + $0x90] sm:$0xff] }
 0x17d   : > { %v781_v7 = vrot.slane %v763_v4, 4  ;;  %v3055_v4 = vld [vmem:[%s4076_s3 + $0xd0] sm:$0xff] }
 0x17e   : > { %1794 = vmatpush.bf16.msra.mxu2 %v3048_v58  ;;  %1824 = vmatpush.bf16.msra.mxu3 %v3055_v4  ;;  %v3029_v4 = vld [vmem:[%s4076_s3] sm:$0xff] }
 0x17f   : > { %v796_v18 = vunpack.c.l.b16 %v781_v7 }
 0x182   : > { %1795 = vmatpush.bf16.msra.mxu2 %v3047_v3  ;;  %v3076_v3 = vld [vmem:[%s4076_s3 + $0x178] sm:$0xff] }
 0x183   : > { %v761_v9 = vpop.permute.xlu0 %760  ;;  %v970_v6 = vpop.permute.xlu2 %969 }
 0x184   : > { %v780_v10 = vrot.slane %v761_v9, 4  ;;  %v765_v12 = vpop.permute.xlu1 %764 }
 0x185   : > { %v782_v17 = vrot.slane %v765_v12, 4  ;;  %1194 = vmatmul.bf16.gmra.mxu2 %v3708_v14  ;;  %1223 = vmatmul.bf16.gmra.mxu3 %v3711_v15  ;;  %v799_v12 = vunpack.c.l.b16 %v784_v62 }
 0x186   : > { %v795_v19 = vunpack.c.l.b16 %v780_v10 }
 0x187   : > { %v797_v24 = vunpack.c.l.b16 %v782_v17 }
 0x188   : > { %v805_v25 = vpack.c.b16 %v796_v18, %v795_v19  ;;  %v3041_v18 = vld [vmem:[%s4076_s3 + $0x60] sm:$0xff] }
 0x189   : > { %v806_v27 = vpack.c.b16 %v798_v22, %v797_v24 }
 0x18a   : > { %v811_v32 = vshrl.u32 %v805_v25, 16  ;;  %v814_v38 = vshll.u32 %v805_v25, 16 }
 0x18b   : > { %v818_v33 = vshrl.u32 %v806_v27, 16  ;;  %v966_v34 = vpop.permute.xlu0 %965  ;;  %v821_v52 = vshll.u32 %v806_v27, 16  ;;  %v957_v31 = vpop.permute.xlu2 %956 }
 0x18c   : > { %v813_v37 = vrot.slane %v811_v32, 7  ;;  %v968_v39 = vpop.permute.xlu1 %967  ;;  %v996_v44 = vsel %vm722_vm10, %v3698_v61, %v966_v34 }
 0x18d   : > { %v820_v41 = vrot.slane %v818_v33, 7  ;;  %v3040_v33 = vld [vmem:[%s4076_s3 + $0x58] sm:$0xff] }
 0x18e   : > { %v816_v46 = vor.u32 %v814_v38, %v813_v37  ;;  %v3046_v38 = vld [vmem:[%s4076_s3 + $0x88] sm:$0xff] }
 0x18f   : > { %v823_v55 = vor.u32 %v821_v52, %v820_v41  ;;  %1796 = vmatpush.bf16.msra.mxu2 %v3046_v38 }
 0x190   : > { %v850_v50 = vsel %vm3383_vm12, %v780_v10, %v816_v46  ;;  %v3035_v10 = vld [vmem:[%s4076_s3 + $0x30] sm:$0xff]  ;;  %v3045_v46 = vld [vmem:[%s4076_s3 + $0x80] sm:$0xff] }
 0x191   : > { %v851_v23 = vsel %vm3383_vm12, %v782_v17, %v823_v55  ;;  %v977_v51 = vsel %vm722_vm10, %v850_v50, %v3698_v61  ;;  %v3043_v61 = vld [vmem:[%s4076_s3 + $0x70] sm:$0xff]  ;;  %1945 = vmatpush.bf16.msra.mxu0 %v3035_v10  ;;  %v3038_v55 = vld [vmem:[%s4076_s3 + $0x48] sm:$0xff]  ;;  %v3037_v50 = vld [vmem:[%s4076_s3 + $0x40] sm:$0xff] }
 0x192   : > { %1974 = vmatpush.bf16.msra.mxu1 %v3043_v61 }
 0x193   : > { %v953_v0 = vpop.permute.xlu0 %952  ;;  %1797 = vmatpush.bf16.msra.mxu2 %v3045_v46  ;;  %v779_v2 = vpop.permute.xlu2 %778 }
 0x194   : > { %v3753_v63 = vsel %vm722_vm10, %v851_v23, %v953_v0  ;;  %v3756_v53 = vsel %vm722_vm10, %v953_v0, %v968_v39  ;;  %v955_v56 = vpop.permute.xlu1 %954  ;;  %v3054_v39 = vld [vmem:[%s4076_s3 + $0xc8] sm:$0xff] }
 0x195   : > { %1333 = vmatmul.bf16.vlgmr.msrb.gmra.mxu2 %v977_v51  ;;  %1362 = vmatmul.bf16.vlgmr.msrb.gmra.mxu3 %v996_v44  ;;  %v3797_v32 = vsel %vm722_vm10, %v955_v56, %v970_v6  ;;  %v789_v51 = vrot.slane %v779_v2, 4 }
 0x196   : > { %1520 = vmatmul.bf16.vlgmr.msrb.gmra.mxu0 %v3753_v63  ;;  %1549 = vmatmul.bf16.vlgmr.msrb.gmra.mxu1 %v3756_v53 }
 0x197   : > { %1975 = vmatpush.bf16.msra.mxu1 %v3042_v8  ;;  %1946 = vmatpush.bf16.msra.mxu0 %v3034_v21  ;;  %v804_v61 = vunpack.c.l.b16 %v789_v51  ;;  %v3067_v8 = vld [vmem:[%s4076_s3 + $0x130] sm:$0xff] }
 0x198   : > { %1825 = vmatpush.bf16.msra.mxu3 %v3054_v39  ;;  %3077 = vmatpush.bf16.msrb.mxu2 %v3068_v13 }
 0x19b   : > { %v771_v7 = vpop.permute.xlu0 %770  ;;  %1976 = vmatpush.bf16.msra.mxu1 %v3041_v18  ;;  %1947 = vmatpush.bf16.msra.mxu0 %v3033_v40  ;;  %v3069_v40 = vld [vmem:[%s4076_s3 + $0x140] sm:$0xff] }
 0x19c   : > { %v785_v9 = vrot.slane %v771_v7, 4  ;;  %v775_v16 = vpop.permute.xlu1 %774  ;;  %1826 = vmatpush.bf16.msra.mxu3 %v3053_v54  ;;  %3078 = vmatpush.bf16.msrb.mxu2 %v3067_v8 }
 0x19d   : > { %v787_v22 = vrot.slane %v775_v16, 4 }
 0x19e   : > { %v800_v17 = vunpack.c.l.b16 %v785_v9  ;;  %v3075_v9 = vld [vmem:[%s4076_s3 + $0x170] sm:$0xff] }
 0x19f   : > { %v802_v36 = vunpack.c.l.b16 %v787_v22  ;;  %1977 = vmatpush.bf16.msra.mxu1 %v3040_v33  ;;  %1948 = vmatpush.bf16.msra.mxu0 %v3032_v45  ;;  %v3074_v22 = vld [vmem:[%s4076_s3 + $0x168] sm:$0xff] }
 0x1a0   : > { %v807_v19 = vpack.c.b16 %v800_v17, %v799_v12  ;;  %3085 = vmatpush.bf16.msrb.mxu3 %v3076_v3 }
 0x1a2   : > { %v825_v49 = vshrl.u32 %v807_v19, 16  ;;  %v828_v27 = vshll.u32 %v807_v19, 16 }
 0x1a3   : > { %v773_v24 = vpop.permute.xlu0 %772  ;;  %1978 = vmatpush.bf16.msra.mxu1 %v3039_v26  ;;  %1949 = vmatpush.bf16.msra.mxu0 %v3031_v48 }
 0x1a4   : > { %v827_v25 = vrot.slane %v825_v49, 7  ;;  %v786_v30 = vrot.slane %v773_v24, 4  ;;  %v777_v47 = vpop.permute.xlu1 %776  ;;  %3086 = vmatpush.bf16.msrb.mxu3 %v3075_v9  ;;  %v3066_v49 = vld [vmem:[%s4076_s3 + $0x128] sm:$0xff] }
 0x1a5   : > { %1338 = vmatmul.bf16.gmra.mxu2 %v3753_v63  ;;  %1367 = vmatmul.bf16.gmra.mxu3 %v3756_v53  ;;  %v788_v23 = vrot.slane %v777_v47, 4 }
 0x1a6   : > { %v830_v34 = vor.u32 %v828_v27, %v827_v25  ;;  %v801_v37 = vunpack.c.l.b16 %v786_v30  ;;  %1554 = vmatmul.bf16.gmra.mxu1 %v3797_v32  ;;  %3079 = vmatpush.bf16.msrb.mxu2 %v3066_v49  ;;  %v3065_v27 = vld [vmem:[%s4076_s3 + $0x120] sm:$0xff] }
 0x1a7   : > { %1979 = vmatpush.bf16.msra.mxu1 %v3038_v55  ;;  %v803_v58 = vunpack.c.l.b16 %v788_v23  ;;  %1950 = vmatpush.bf16.msra.mxu0 %v3030_v57 }
 0x1a8   : > { %v808_v41 = vpack.c.b16 %v802_v36, %v801_v37  ;;  %v852_v52 = vsel %vm3383_vm12, %v784_v62, %v830_v34  ;;  %3087 = vmatpush.bf16.msrb.mxu3 %v3074_v22  ;;  %v3070_v37 = vld [vmem:[%s4076_s3 + $0x148] sm:$0xff] }
 0x1a9   : > { %v3815_v42 = vsel %vm722_vm10, %v852_v52, %v955_v56  ;;  %v809_v6 = vpack.c.b16 %v804_v61, %v803_v58 }
 0x1aa   : > { %v832_v43 = vshrl.u32 %v808_v41, 16  ;;  %1525 = vmatmul.bf16.gmra.mxu0 %v3815_v42  ;;  %v835_v0 = vshll.u32 %v808_v41, 16  ;;  %3080 = vmatpush.bf16.msrb.mxu2 %v3065_v27 }
 0x1ab   : > { %v972_v44 = vpop.permute.xlu0 %971  ;;  %1980 = vmatpush.bf16.msra.mxu1 %v3037_v50  ;;  %1951 = vmatpush.bf16.msra.mxu0 %v3029_v4  ;;  %v839_v10 = vshrl.u32 %v809_v6, 16  ;;  %v842_v17 = vshll.u32 %v809_v6, 16 }
 0x1ac   : > { %v834_v1 = vrot.slane %v832_v43, 7  ;;  %v3845_v60 = vsel %vm722_vm10, %v957_v31, %v972_v44  ;;  %v974_v18 = vpop.permute.xlu1 %973 }
 0x1ad   : > { %v841_v12 = vrot.slane %v839_v10, 7 }
 0x1ae   : > { %v837_v56 = vor.u32 %v835_v0, %v834_v1  ;;  %3081 = vmatpush.bf16.msrb.mxu2 %v3064_v35 }
 0x1af   : > { %2159 = vmatpush.bf16.msrb.mxu1 %v3076_v3  ;;  %2130 = vmatpush.bf16.msrb.mxu0 %v3068_v13  ;;  %v844_v19 = vor.u32 %v842_v17, %v841_v12 }
 0x1b0   : > { %v853_v62 = vsel %vm3383_vm12, %v786_v30, %v837_v56  ;;  %v3073_v30 = vld [vmem:[%s4076_s3 + $0x160] sm:$0xff] }
 0x1b1   : > { %v3860_v7 = vsel %vm722_vm10, %v853_v62, %v957_v31  ;;  %v854_v24 = vsel %vm3383_vm12, %v788_v23, %v844_v19  ;;  %3088 = vmatpush.bf16.msrb.mxu3 %v3073_v30  ;;  %v3072_v31 = vld [vmem:[%s4076_s3 + $0x158] sm:$0xff]  ;;  %v3962_v56 = vld [vmem:[%s4077_s4] ss:$0 sm:$0xff] }
 0x1b3   : > { %2160 = vmatpush.bf16.msrb.mxu1 %v3075_v9  ;;  %2131 = vmatpush.bf16.msrb.mxu0 %v3067_v8  ;;  %v959_v16 = vpop.permute.xlu0 %958 }
 0x1b4   : > { %v3872_v21 = vsel %vm722_vm10, %v959_v16, %v974_v18  ;;  %v993_v25 = vsel %vm722_vm10, %v854_v24, %v959_v16 }
 0x1b5   : > { %1343 = vmatmul.bf16.gmra.mxu2 %v3815_v42  ;;  %1372 = vmatmul.bf16.gmra.mxu3 %v3797_v32 }
 0x1b6   : > { %1559 = vmatmul.bf16.gmra.mxu1 %v3845_v60  ;;  %3089 = vmatpush.bf16.msrb.mxu3 %v3072_v31 }
 0x1b7   : > { %2161 = vmatpush.bf16.msrb.mxu1 %v3074_v22  ;;  %2132 = vmatpush.bf16.msrb.mxu0 %v3066_v49 }
 0x1ba   : > { %1530 = vmatmul.bf16.gmra.mxu0 %v3860_v7 }
 0x1bb   : > { %2162 = vmatpush.bf16.msrb.mxu1 %v3073_v30  ;;  %2133 = vmatpush.bf16.msrb.mxu0 %v3065_v27  ;;  %v696_v27 = vpop.permute.xlu2 %695 }
 0x1bf   : > { %2163 = vmatpush.bf16.msrb.mxu1 %v3072_v31  ;;  %2134 = vmatpush.bf16.msrb.mxu0 %v3064_v35 }
 0x1c5   : > { %1348 = vmatmul.bf16.gmra.mxu2 %v3860_v7  ;;  %1377 = vmatmul.bf16.gmra.mxu3 %v3845_v60 }
 0x1c6   : > { %1564 = vmatmul.bf16.gmra.mxu1 %v3872_v21 }
 0x1ca   : > { %1535 = vmatmul.bf16.gmra.mxu0 %v993_v25 }
 0x1d5   : > { %1798 = vmatmul.bf16.vlgmr.msra.gmra.mxu2 %v3753_v63  ;;  %1827 = vmatmul.bf16.vlgmr.msra.gmra.mxu3 %v3756_v53  ;;  %v3071_v63 = vld [vmem:[%s4076_s3 + $0x150] sm:$0xff] }
 0x1d6   : > { %1981 = vmatmul.bf16.vlgmr.msra.gmra.mxu1 %v3614_v20  ;;  %v3063_v20 = vld [vmem:[%s4076_s3 + $0x110] sm:$0xff]  ;;  %3090 = vmatpush.bf16.msrb.mxu3 %v3071_v63 }
 0x1d7   : > { %3082 = vmatpush.bf16.msrb.mxu2 %v3063_v20  ;;  %2164 = vmatpush.bf16.msrb.mxu1 %v3071_v63 }
 0x1d8   : > { %v1180_v33 = vpop.f32.mrf.mxu2  ;;  %v1209_v34 = vpop.f32.mrf.mxu3  ;;  %2135 = vmatpush.bf16.msrb.mxu0 %v3063_v20 }
 0x1d9   : > { %v1210_v2 = vadd.f32 %v1209_v34, %v1180_v33  ;;  %v706_v34 = vpop.permute.xlu0 %705  ;;  %v721_v20 = vpop.permute.xlu1 %720 }
 0x1da   : > { %1952 = vmatmul.bf16.vlgmr.msra.gmra.mxu0 %v3611_v11  ;;  %v3062_v11 = vld [vmem:[%s4076_s3 + $0x108] sm:$0xff]  ;;  %3091 = vmatpush.bf16.msrb.mxu3 %v3070_v37 }
 0x1db   : > { %3083 = vmatpush.bf16.msrb.mxu2 %v3062_v11  ;;  %2165 = vmatpush.bf16.msrb.mxu1 %v3070_v37 }
 0x1dc   : > { %2136 = vmatpush.bf16.msrb.mxu0 %v3062_v11 }
 0x1de   : > { %3092 = vmatpush.bf16.msrb.mxu3 %v3069_v40 }
 0x1df   : > { %2166 = vmatpush.bf16.msrb.mxu1 %v3069_v40  ;;  %v756_v40 = vsel %vm722_vm10, %v706_v34, %v721_v20 }
 0x1e0   : > { %v1182_v53 = vpop.f32.mrf.mxu2  ;;  %v1211_v36 = vpop.f32.mrf.mxu3 }
 0x1e1   : > { %v1212_v57 = vadd.f32 %v1211_v36, %v1182_v53 }
 0x1e5   : > { %1803 = vmatmul.bf16.gmra.mxu2 %v3815_v42  ;;  %1832 = vmatmul.bf16.gmra.mxu3 %v3797_v32  ;;  %v3061_v32 = vld [vmem:[%s4076_s3 + $0x100] sm:$0xff] }
 0x1e6   : > { %1986 = vmatmul.bf16.gmra.mxu1 %v3642_v29  ;;  %3084 = vmatpush.bf16.msrb.mxu2 %v3061_v32 }
 0x1e7   : > { %2137 = vmatpush.bf16.msrb.mxu0 %v3061_v32  ;;  %v741_v32 = vsel %vm722_vm10, %v696_v27, %v706_v34 }
 0x1e8   : > { %v3915_v38 = vpop.f32.mrf.mxu2  ;;  %v3917_v39 = vpop.f32.mrf.mxu3 }
 0x1e9   : > { %v1215_v9 = vadd.f32 %v3917_v39, %v3915_v38 }
 0x1ea   : > { %1957 = vmatmul.bf16.gmra.mxu0 %v3639_v28 }
 0x1f0   : > { %v3926_v41 = vpop.f32.mrf.mxu2  ;;  %v3928_v52 = vpop.f32.mrf.mxu3 }
 0x1f5   : > { %1808 = vmatmul.bf16.gmra.mxu2 %v3860_v7  ;;  %1837 = vmatmul.bf16.gmra.mxu3 %v3845_v60 }
 0x1f6   : > { %1991 = vmatmul.bf16.gmra.mxu1 %v3693_v5 }
 0x1f8   : > { %v3933_v42 = vpop.f32.mrf.mxu2  ;;  %v3935_v26 = vpop.f32.mrf.mxu3 }
 0x1fa   : > { %1962 = vmatmul.bf16.gmra.mxu0 %v3690_v59 }
 0x200   : > { %v3938_v43 = vpop.f32.mrf.mxu2  ;;  %v3940_v45 = vpop.f32.mrf.mxu3 }
 0x205   : > { %1813 = vmatmul.bf16.gmra.mxu2 %v993_v25  ;;  %1842 = vmatmul.bf16.gmra.mxu3 %v3872_v21 }
 0x206   : > { %1996 = vmatmul.bf16.gmra.mxu1 %v3711_v15 }
 0x208   : > { %v3944_v46 = vpop.f32.mrf.mxu2  ;;  %v3946_v54 = vpop.f32.mrf.mxu3 }
 0x20a   : > { %1967 = vmatmul.bf16.gmra.mxu0 %v3708_v14 }
 0x210   : > { %v3950_v55 = vpop.f32.mrf.mxu2  ;;  %v3952_v47 = vpop.f32.mrf.mxu3 }
 0x213   : > { %v1550_v48 = vpop.f32.mrf.mxu1  ;;  %v1521_v1 = vpop.f32.mrf.mxu0 }
 0x214   : > { %v1551_v51 = vadd.f32 %v1550_v48, %v1521_v1 }
 0x215   : > { %2143 = vmatmul.bf16.vlgmr.msrb.gmra.mxu2 %v3690_v59  ;;  %2172 = vmatmul.bf16.vlgmr.msrb.gmra.mxu3 %v3693_v5 }
 0x216   : > { %2167 = vmatmul.bf16.vlgmr.msrb.gmra.mxu1 %v3642_v29 }
 0x218   : > { %v1334_v50 = vpop.f32.mrf.mxu2  ;;  %v1363_v0 = vpop.f32.mrf.mxu3 }
 0x219   : > { %v1335_v23 = vadd.f32 %v1334_v50, %v1210_v2 }
 0x21a   : > { %2138 = vmatmul.bf16.vlgmr.msrb.gmra.mxu0 %v3639_v28 }
 0x21b   : > { %v1364_v44 = vadd.f32 %v1363_v0, %v1335_v23  ;;  %v1552_v59 = vpop.f32.mrf.mxu1  ;;  %v1523_v58 = vpop.f32.mrf.mxu0 }
 0x21c   : > { %v1553_v3 = vadd.f32 %v1552_v59, %v1523_v58  ;;  %v1222_v58 = vadd.f32 %v3940_v45, %v3938_v43 }
 0x21d   : > { %v1570_v5 = vadd.f32 %v1551_v51, %v1364_v44 }
 0x21f   : > { %v1582_v29 = vadd.f32 %v3962_v56, %v1570_v5 }
 0x220   : > { %v1336_v60 = vpop.f32.mrf.mxu2  ;;  %v1365_v61 = vpop.f32.mrf.mxu3 }
 0x221   : > { %vm1590_vm12 = vcmp.ge.f32.partialorder %v1582_v29, 0.0  ;;  %v1598_v62 = vmul.f32 0.01, %v1582_v29  ;;  %v1337_v28 = vadd.f32 %v1336_v60, %v1212_v57 }
 0x223   : > { %v1606_v13 = vsel %vm1590_vm12, %v1582_v29, %v1598_v62  ;;  %v1366_v4 = vadd.f32 %v1365_v61, %v1337_v28  ;;  %v1555_v6 = vpop.f32.mrf.mxu1 }
 0x224   : > { %v1614_v7 = vpack.c.bf16 %v1606_v13, %v1606_v13 }
 0x225   : > { %v1571_v8 = vadd.f32 %v1553_v3, %v1366_v4  ;;  %2148 = vmatmul.bf16.gmra.mxu2 %v3708_v14  ;;  %2177 = vmatmul.bf16.gmra.mxu3 %v3711_v15  ;;  %v1217_v15 = vadd.f32 %v3928_v52, %v3926_v41  ;;  %v1220_v52 = vadd.f32 %v3935_v26, %v3933_v42 }
 0x226   : > { %1622 = vst [vmem:[%s3968_s11] sm:$0xf] %v1614_v7 }
 0x227   : > { %v1583_v10 = vadd.f32 %v3962_v56, %v1571_v8  ;;  %v1526_v12 = vpop.f32.mrf.mxu0 }
 0x228   : > { %v1339_v17 = vpop.f32.mrf.mxu2  ;;  %v1368_v16 = vpop.f32.mrf.mxu3  ;;  %v1556_v49 = vadd.f32 %v1555_v6, %v1526_v12 }
 0x229   : > { %vm1591_vm13 = vcmp.ge.f32.partialorder %v1583_v10, 0.0  ;;  %v1599_v18 = vmul.f32 0.01, %v1583_v10  ;;  %v1340_v19 = vadd.f32 %v1339_v17, %v1215_v9  ;;  %v1225_v9 = vadd.f32 %v3946_v54, %v3944_v46 }
 0x22b   : > { %v1607_v21 = vsel %vm1591_vm13, %v1583_v10, %v1599_v18  ;;  %v1369_v22 = vadd.f32 %v1368_v16, %v1340_v19  ;;  %v1557_v24 = vpop.f32.mrf.mxu1 }
 0x22c   : > { %v1615_v14 = vpack.c.bf16 %v1607_v21, %v1607_v21 }
 0x22d   : > { %v1572_v25 = vadd.f32 %v1556_v49, %v1369_v22 }
 0x22e   : > { %1623 = vst [vmem:[%s3968_s11 + $0x8] sm:$0xf] %v1615_v14  ;;  %v1227_v14 = vadd.f32 %v3952_v47, %v3950_v55 }
 0x22f   : > { %v1584_v30 = vadd.f32 %v3962_v56, %v1572_v25  ;;  %v1528_v35 = vpop.f32.mrf.mxu0 }
 0x230   : > { %v1341_v31 = vpop.f32.mrf.mxu2  ;;  %v1370_v33 = vpop.f32.mrf.mxu3  ;;  %v1558_v11 = vadd.f32 %v1557_v24, %v1528_v35 }
 0x231   : > { %vm1592_vm1 = vcmp.ge.f32.partialorder %v1584_v30, 0.0  ;;  %v1600_v63 = vmul.f32 0.01, %v1584_v30  ;;  %v1342_v53 = vadd.f32 %v1341_v31, %v1217_v15 }
 0x233   : > { %v1608_v36 = vsel %vm1592_vm1, %v1584_v30, %v1600_v63  ;;  %v1371_v37 = vadd.f32 %v1370_v33, %v1342_v53  ;;  %v1560_v38 = vpop.f32.mrf.mxu1 }
 0x234   : > { %v1616_v39 = vpack.c.bf16 %v1608_v36, %v1608_v36 }
 0x235   : > { %v1573_v41 = vadd.f32 %v1558_v11, %v1371_v37  ;;  %2153 = vmatmul.bf16.gmra.mxu2 %v741_v32  ;;  %2182 = vmatmul.bf16.gmra.mxu3 %v756_v40 }
 0x236   : > { %1624 = vst [vmem:[%s3968_s11 + $0x10] sm:$0xf] %v1616_v39 }
 0x237   : > { %v1585_v48 = vadd.f32 %v3962_v56, %v1573_v41  ;;  %v1531_v1 = vpop.f32.mrf.mxu0 }
 0x238   : > { %v1344_v2 = vpop.f32.mrf.mxu2  ;;  %v1373_v50 = vpop.f32.mrf.mxu3  ;;  %v1561_v44 = vadd.f32 %v1560_v38, %v1531_v1 }
 0x239   : > { %vm1593_vm2 = vcmp.ge.f32.partialorder %v1585_v48, 0.0  ;;  %v1601_v0 = vmul.f32 0.01, %v1585_v48  ;;  %v1345_v23 = vadd.f32 %v1344_v2, %v1220_v52 }
 0x23b   : > { %v1609_v51 = vsel %vm1593_vm2, %v1585_v48, %v1601_v0  ;;  %v1374_v59 = vadd.f32 %v1373_v50, %v1345_v23  ;;  %v1562_v5 = vpop.f32.mrf.mxu1 }
 0x23c   : > { %v1617_v57 = vpack.c.bf16 %v1609_v51, %v1609_v51 }
 0x23d   : > { %v1574_v29 = vadd.f32 %v1561_v44, %v1374_v59 }
 0x23e   : > { %1625 = vst [vmem:[%s3968_s11 + $0x18] sm:$0xf] %v1617_v57 }
 0x23f   : > { %v1586_v42 = vadd.f32 %v3962_v56, %v1574_v29  ;;  %v1533_v26 = vpop.f32.mrf.mxu0 }
 0x240   : > { %v1346_v60 = vpop.f32.mrf.mxu2  ;;  %v1375_v61 = vpop.f32.mrf.mxu3  ;;  %v1563_v3 = vadd.f32 %v1562_v5, %v1533_v26 }
 0x241   : > { %vm1594_vm3 = vcmp.ge.f32.partialorder %v1586_v42, 0.0  ;;  %v1602_v62 = vmul.f32 0.01, %v1586_v42  ;;  %v1347_v28 = vadd.f32 %v1346_v60, %v1222_v58 }
 0x243   : > { %v1610_v13 = vsel %vm1594_vm3, %v1586_v42, %v1602_v62  ;;  %v1376_v4 = vadd.f32 %v1375_v61, %v1347_v28  ;;  %v1565_v6 = vpop.f32.mrf.mxu1 }
 0x244   : > { %v1618_v7 = vpack.c.bf16 %v1610_v13, %v1610_v13 }
 0x245   : > { %v1575_v8 = vadd.f32 %v1563_v3, %v1376_v4 }
 0x246   : > { %1626 = vst [vmem:[%s3968_s11 + $0x20] sm:$0xf] %v1618_v7 }
 0x247   : > { %v1587_v43 = vadd.f32 %v3962_v56, %v1575_v8  ;;  %v1536_v45 = vpop.f32.mrf.mxu0 }
 0x248   : > { %v1349_v10 = vpop.f32.mrf.mxu2  ;;  %v1378_v12 = vpop.f32.mrf.mxu3  ;;  %v1566_v19 = vadd.f32 %v1565_v6, %v1536_v45 }
 0x249   : > { %vm1595_vm4 = vcmp.ge.f32.partialorder %v1587_v43, 0.0  ;;  %v1603_v17 = vmul.f32 0.01, %v1587_v43  ;;  %v1350_v16 = vadd.f32 %v1349_v10, %v1225_v9 }
 0x24b   : > { %v1611_v18 = vsel %vm1595_vm4, %v1587_v43, %v1603_v17  ;;  %v1379_v21 = vadd.f32 %v1378_v12, %v1350_v16  ;;  %v1567_v49 = vpop.f32.mrf.mxu1  ;;  %v4028_v16 = vld [vmem:[%s4077_s4] ss:$0 sm:$0xff] }
 0x24c   : > { %v1619_v22 = vpack.c.bf16 %v1611_v18, %v1611_v18 }
 0x24d   : > { %v1576_v24 = vadd.f32 %v1566_v19, %v1379_v21 }
 0x24e   : > { %1627 = vst [vmem:[%s3968_s11 + $0x28] sm:$0xf] %v1619_v22 }
 0x24f   : > { %v1588_v46 = vadd.f32 %v3962_v56, %v1576_v24  ;;  %v1538_v54 = vpop.f32.mrf.mxu0 }
 0x250   : > { %v1351_v25 = vpop.f32.mrf.mxu2  ;;  %v1380_v15 = vpop.f32.mrf.mxu3  ;;  %v1568_v31 = vadd.f32 %v1567_v49, %v1538_v54 }
 0x251   : > { %vm1596_vm5 = vcmp.ge.f32.partialorder %v1588_v46, 0.0  ;;  %v1604_v27 = vmul.f32 0.01, %v1588_v46  ;;  %v1352_v30 = vadd.f32 %v1351_v25, %v1227_v14 }
 0x253   : > { %v1612_v35 = vsel %vm1596_vm5, %v1588_v46, %v1604_v27  ;;  %v1381_v33 = vadd.f32 %v1380_v15, %v1352_v30  ;;  %v1982_v34 = vpop.f32.mrf.mxu1 }
 0x254   : > { %v1620_v20 = vpack.c.bf16 %v1612_v35, %v1612_v35 }
 0x255   : > { %v1577_v63 = vadd.f32 %v1568_v31, %v1381_v33 }
 0x256   : > { %1628 = vst [vmem:[%s3968_s11 + $0x30] sm:$0xf] %v1620_v20 }
 0x257   : > { %v1589_v53 = vadd.f32 %v3962_v56, %v1577_v63  ;;  %v1953_v36 = vpop.f32.mrf.mxu0 }
 0x258   : > { %v1799_v55 = vpop.f32.mrf.mxu2  ;;  %v1828_v47 = vpop.f32.mrf.mxu3 }
 0x259   : > { %vm1597_vm6 = vcmp.ge.f32.partialorder %v1589_v53, 0.0  ;;  %v1605_v11 = vmul.f32 0.01, %v1589_v53  ;;  %v1829_v3 = vadd.f32 %v1828_v47, %v1799_v55 }
 0x25b   : > { %v1613_v37 = vsel %vm1597_vm6, %v1589_v53, %v1605_v11  ;;  %v1984_v38 = vpop.f32.mrf.mxu1  ;;  %v1954_v8 = vadd.f32 %v1953_v36, %v1829_v3 }
 0x25c   : > { %v1621_v39 = vpack.c.bf16 %v1613_v37, %v1613_v37 }
 0x25d   : > { %v1983_v12 = vadd.f32 %v1982_v34, %v1954_v8 }
 0x25e   : > { %1629 = vst [vmem:[%s3968_s11 + $0x38] sm:$0xf] %v1621_v39 }
 0x25f   : > { %v1955_v32 = vpop.f32.mrf.mxu0 }
 0x260   : > { %v1801_v40 = vpop.f32.mrf.mxu2  ;;  %v1830_v41 = vpop.f32.mrf.mxu3 }
 0x261   : > { %v1831_v10 = vadd.f32 %v1830_v41, %v1801_v40 }
 0x263   : > { %v1987_v52 = vpop.f32.mrf.mxu1  ;;  %v1956_v46 = vadd.f32 %v1955_v32, %v1831_v10 }
 0x265   : > { %v1985_v20 = vadd.f32 %v1984_v38, %v1956_v46 }
 0x267   : > { %v1958_v48 = vpop.f32.mrf.mxu0 }
 0x268   : > { %v1804_v1 = vpop.f32.mrf.mxu2  ;;  %v1833_v2 = vpop.f32.mrf.mxu3 }
 0x269   : > { %v1834_v7 = vadd.f32 %v1833_v2, %v1804_v1 }
 0x26b   : > { %v1989_v50 = vpop.f32.mrf.mxu1  ;;  %v1959_v9 = vadd.f32 %v1958_v48, %v1834_v7 }
 0x26d   : > { %v1988_v49 = vadd.f32 %v1987_v52, %v1959_v9 }
 0x26f   : > { %v1960_v0 = vpop.f32.mrf.mxu0 }
 0x270   : > { %v1806_v23 = vpop.f32.mrf.mxu2  ;;  %v1835_v56 = vpop.f32.mrf.mxu3 }
 0x271   : > { %v1836_v21 = vadd.f32 %v1835_v56, %v1806_v23 }
 0x273   : > { %v4001_v51 = vpop.f32.mrf.mxu1  ;;  %v1961_v25 = vadd.f32 %v1960_v0, %v1836_v21 }
 0x275   : > { %v1990_v11 = vadd.f32 %v1989_v50, %v1961_v25 }
 0x277   : > { %v1963_v44 = vpop.f32.mrf.mxu0 }
 0x278   : > { %v1809_v59 = vpop.f32.mrf.mxu2  ;;  %v1838_v5 = vpop.f32.mrf.mxu3 }
 0x279   : > { %v1839_v33 = vadd.f32 %v1838_v5, %v1809_v59 }
 0x27b   : > { %v4003_v57 = vpop.f32.mrf.mxu1  ;;  %v1964_v41 = vadd.f32 %v1963_v44, %v1839_v33 }
 0x27d   : > { %v1993_v50 = vadd.f32 %v4001_v51, %v1964_v41 }
 0x27f   : > { %v4005_v29 = vpop.f32.mrf.mxu0 }
 0x280   : > { %v4007_v58 = vpop.f32.mrf.mxu2  ;;  %v1840_v42 = vpop.f32.mrf.mxu3 }
 0x281   : > { %v1841_v56 = vadd.f32 %v1840_v42, %v4007_v58 }
 0x283   : > { %v4009_v26 = vpop.f32.mrf.mxu1  ;;  %v1966_v8 = vadd.f32 %v4005_v29, %v1841_v56 }
 0x285   : > { %v1995_v42 = vadd.f32 %v4003_v57, %v1966_v8 }
 0x287   : > { %v4011_v60 = vpop.f32.mrf.mxu0 }
 0x288   : > { %v4013_v61 = vpop.f32.mrf.mxu2  ;;  %v4015_v62 = vpop.f32.mrf.mxu3 }
 0x289   : > { %v1844_v51 = vadd.f32 %v4015_v62, %v4013_v61 }
 0x28b   : > { %v4017_v28 = vpop.f32.mrf.mxu1 }
 0x28f   : > { %v4019_v13 = vpop.f32.mrf.mxu0 }
 0x290   : > { %v4021_v4 = vpop.f32.mrf.mxu2  ;;  %v4023_v6 = vpop.f32.mrf.mxu3 }
 0x293   : > { %v2168_v43 = vpop.f32.mrf.mxu1 }
 0x297   : > { %v2139_v45 = vpop.f32.mrf.mxu0 }
 0x298   : > { %v2169_v17 = vadd.f32 %v2168_v43, %v2139_v45  ;;  %v2144_v18 = vpop.f32.mrf.mxu2  ;;  %v2173_v19 = vpop.f32.mrf.mxu3 }
 0x299   : > { %v2174_v22 = vadd.f32 %v2173_v19, %v2144_v18  ;;  %v1969_v19 = vadd.f32 %v4011_v60, %v1844_v51 }
 0x29a   : > { %v2188_v24 = vadd.f32 %v2169_v17, %v1983_v12 }
 0x29b   : > { %v2190_v14 = vadd.f32 %v2174_v22, %v1988_v49  ;;  %v2170_v35 = vpop.f32.mrf.mxu1  ;;  %v1998_v62 = vadd.f32 %v4009_v26, %v1969_v19 }
 0x29c   : > { %v2200_v54 = vadd.f32 %v4028_v16, %v2188_v24  ;;  %v1846_v24 = vadd.f32 %v4023_v6, %v4021_v4 }
 0x29d   : > { %v2202_v15 = vadd.f32 %v4028_v16, %v2190_v14 }
 0x29e   : > { %vm2208_vm7 = vcmp.ge.f32.partialorder %v2200_v54, 0.0  ;;  %v2216_v27 = vmul.f32 0.01, %v2200_v54 }
 0x29f   : > { %vm2210_vm8 = vcmp.ge.f32.partialorder %v2202_v15, 0.0  ;;  %v2218_v30 = vmul.f32 0.01, %v2202_v15  ;;  %v2141_v31 = vpop.f32.mrf.mxu0 }
 0x2a0   : > { %v2224_v34 = vsel %vm2208_vm7, %v2200_v54, %v2216_v27  ;;  %v2171_v63 = vadd.f32 %v2170_v35, %v2141_v31  ;;  %v2146_v53 = vpop.f32.mrf.mxu2  ;;  %v2175_v36 = vpop.f32.mrf.mxu3  ;;  %v1971_v54 = vadd.f32 %v4019_v13, %v1846_v24 }
 0x2a1   : > { %v2232_v55 = vpack.c.bf16 %v2224_v34, %v2224_v34  ;;  %v2226_v47 = vsel %vm2210_vm8, %v2202_v15, %v2218_v30  ;;  %v2176_v37 = vadd.f32 %v2175_v36, %v2146_v53 }
 0x2a2   : > { %v2234_v39 = vpack.c.bf16 %v2226_v47, %v2226_v47  ;;  %v2189_v32 = vadd.f32 %v2171_v63, %v1985_v20  ;;  %v2000_v4 = vadd.f32 %v4017_v28, %v1971_v54 }
 0x2a3   : > { %2240 = vst [vmem:[%s3968_s11 + $0x4] sm:$0xf] %v2232_v55  ;;  %v2191_v40 = vadd.f32 %v2176_v37, %v1990_v11 }
 0x2a4   : > { %2242 = vst [vmem:[%s3968_s11 + $0x14] sm:$0xf] %v2234_v39  ;;  %v2201_v52 = vadd.f32 %v4028_v16, %v2189_v32 }
 0x2a5   : > { %v2203_v48 = vadd.f32 %v4028_v16, %v2191_v40 }
 0x2a6   : > { %vm2209_vm9 = vcmp.ge.f32.partialorder %v2201_v52, 0.0  ;;  %v2217_v38 = vmul.f32 0.01, %v2201_v52 }
 0x2a7   : > { %vm2211_vm10 = vcmp.ge.f32.partialorder %v2203_v48, 0.0  ;;  %v2219_v1 = vmul.f32 0.01, %v2203_v48 }
 0x2a8   : > { %v2225_v2 = vsel %vm2209_vm9, %v2201_v52, %v2217_v38  ;;  %v2149_v0 = vpop.f32.mrf.mxu2  ;;  %v2178_v23 = vpop.f32.mrf.mxu3 }
 0x2a9   : > { %v2233_v59 = vpack.c.bf16 %v2225_v2, %v2225_v2  ;;  %v2227_v44 = vsel %vm2211_vm10, %v2203_v48, %v2219_v1  ;;  %v2179_v5 = vadd.f32 %v2178_v23, %v2149_v0 }
 0x2aa   : > { %v2235_v3 = vpack.c.bf16 %v2227_v44, %v2227_v44 }
 0x2ab   : > { %2241 = vst [vmem:[%s3968_s11 + $0xc] sm:$0xf] %v2233_v59  ;;  %v2192_v7 = vadd.f32 %v2179_v5, %v1993_v50 }
 0x2ac   : > { %2243 = vst [vmem:[%s3968_s11 + $0x1c] sm:$0xf] %v2235_v3 }
 0x2ad   : > { %v2204_v9 = vadd.f32 %v4028_v16, %v2192_v7 }
 0x2af   : > { %vm2212_vm11 = vcmp.ge.f32.partialorder %v2204_v9, 0.0  ;;  %v2220_v43 = vmul.f32 0.01, %v2204_v9 }
 0x2b0   : > { %v2151_v45 = vpop.f32.mrf.mxu2  ;;  %v2180_v10 = vpop.f32.mrf.mxu3 }
 0x2b1   : > { %v2228_v58 = vsel %vm2212_vm11, %v2204_v9, %v2220_v43  ;;  %v2181_v12 = vadd.f32 %v2180_v10, %v2151_v45 }
 0x2b2   : > { %v2236_v17 = vpack.c.bf16 %v2228_v58, %v2228_v58 }
 0x2b3   : > { %v2193_v18 = vadd.f32 %v2181_v12, %v1995_v42 }
 0x2b4   : > { %2244 = vst [vmem:[%s3968_s11 + $0x24] sm:$0xf] %v2236_v17 }
 0x2b5   : > { %v2205_v29 = vadd.f32 %v4028_v16, %v2193_v18 }
 0x2b7   : > { %vm2213_vm14 = vcmp.ge.f32.partialorder %v2205_v29, 0.0  ;;  %v2221_v21 = vmul.f32 0.01, %v2205_v29 }
 0x2b8   : > { %v2154_v49 = vpop.f32.mrf.mxu2  ;;  %v2183_v22 = vpop.f32.mrf.mxu3 }
 0x2b9   : > { %v2229_v61 = vsel %vm2213_vm14, %v2205_v29, %v2221_v21  ;;  %v2184_v57 = vadd.f32 %v2183_v22, %v2154_v49 }
 0x2ba   : > { %v2237_v14 = vpack.c.bf16 %v2229_v61, %v2229_v61 }
 0x2bb   : > { %v2194_v46 = vadd.f32 %v2184_v57, %v1998_v62 }
 0x2bc   : > { %2245 = vst [vmem:[%s3968_s11 + $0x2c] sm:$0xf] %v2237_v14 }
 0x2bd   : > { %v2206_v60 = vadd.f32 %v4028_v16, %v2194_v46 }
 0x2bf   : > { %vm2214_vm15 = vcmp.ge.f32.partialorder %v2206_v60, 0.0  ;;  %v2222_v25 = vmul.f32 0.01, %v2206_v60 }
 0x2c0   : > { %v2156_v15 = vpop.f32.mrf.mxu2  ;;  %v2185_v27 = vpop.f32.mrf.mxu3 }
 0x2c1   : > { %v2230_v30 = vsel %vm2214_vm15, %v2206_v60, %v2222_v25  ;;  %v2186_v6 = vadd.f32 %v2185_v27, %v2156_v15 }
 0x2c2   : > { %v2238_v35 = vpack.c.bf16 %v2230_v30, %v2230_v30 }
 0x2c3   : > { %v2195_v26 = vadd.f32 %v2186_v6, %v2000_v4 }
 0x2c4   : > { %2246 = vst [vmem:[%s3968_s11 + $0x34] sm:$0xf] %v2238_v35 }
 0x2c5   : > { %v2207_v31 = vadd.f32 %v4028_v16, %v2195_v26 }
 0x2c7   : > { %vm2215_vm0 = vcmp.ge.f32.partialorder %v2207_v31, 0.0  ;;  %v2223_v33 = vmul.f32 0.01, %v2207_v31 }
 0x2c9   : > { %v2231_v34 = vsel %vm2215_vm0, %v2207_v31, %v2223_v33 }
 0x2ca   : > { %v2239_v13 = vpack.c.bf16 %v2231_v34, %v2231_v34 }
 0x2cc   : > { %2247 = vst [vmem:[%s3968_s11 + $0x3c] sm:$0xf] %v2239_v13 }
 0x2cd PF: > { %s15_s22 = sadd.s32 1, %s3176_s22   ;;  %s4083_s18 = smov %s3168_s20 }
 0x2ce   : > { %p12_p8 = scmp.ge.s32.totalorder %s15_s22, 10   ;;  %s4084_s19 = smov %s3172_s21 }
 0x2cf   : > { %s4085_s20 = smov %s4088_s23  ;;  %s4086_s21 = smov %s4092_s24 }
 0x2d0   :  { %14 = sbr.rel (!%p12_p8) target bundleno = 3 (0x3), region = 72 }

</bundles_post_ra>
